<compile_context>
chip_gen: v5e
topology: v5e:2x2
jax: 0.10.0
libtpu: 0.0.40
codegen_flags: <defaults>
</compile_context>

<pallas_src>
import jax
import jax.numpy as jnp
from jax.experimental import pallas as pl
from jax.experimental.pallas import tpu as pltpu

CHANNEL = 32          # fixed by the reference module (`channel = 32`)
NEG_SLOPE = 0.2       # LeakyReLU(0.2)


def _make_fused_kernel(unit_num, channel):
    """Builds the fused per-pixel-tile kernel (stage loop statically unrolled)."""
    C = channel
    neg = NEG_SLOPE

    def kernel(x_ref, uw_ref, ub_ref, cw_ref, cb_ref, o_ref, cat_ref):
        # x_ref   : (C, tm)                 bf16  pixel tile (channels x pixels)
        # uw_ref  : (C, unit_num*C)         bf16  stage-i unit W^T in cols [i*C:(i+1)*C]
        # ub_ref  : (C, unit_num)           f32   stage-i unit bias in col i
        # cw_ref  : (C, sum_i (i+2)*C)      bf16  stage-i conv1x1 W^T in cols [off:off+k]
        # cb_ref  : (C, unit_num)           f32   stage-i conv1x1 bias in col i
        # o_ref   : (C, tm)                 f32   final output tile (lane-dense)
        # cat_ref : ((unit_num+1)*C, tm)    bf16  growing `cat` slab (VMEM only)
        x = x_ref[...]
        cat_ref[0:C, :] = x                       # aligned sublane-row write
        out = x                                   # carried in registers, no scratch

        off = 0
        for i in range(unit_num):                 # static unroll: K differs per stage
            # ---- stand-in unit: 1x1 conv + LeakyReLU(0.2) ----
            wu = uw_ref[:, i * C:(i + 1) * C]                           # (C, C)
            acc = jnp.dot(wu, out, preferred_element_type=jnp.float32)  # (C, tm)
            acc = acc + ub_ref[:, i:i + 1]                              # f32 bias (lane bcast)
            tmp = jnp.maximum(acc, neg * acc)                           # LeakyReLU, f32
            cat_ref[(i + 1) * C:(i + 2) * C, :] = tmp.astype(cat_ref.dtype)

            # ---- conv1x1[i]: Conv2d((i+2)*C -> C, 1x1) + LeakyReLU(0.2) ----
            k = (i + 2) * C
            wc = cw_ref[:, off:off + k]                                 # (C, k)
            acc2 = jnp.dot(wc, cat_ref[0:k, :],
                           preferred_element_type=jnp.float32)          # (C, tm)
            off += k
            acc2 = acc2 + cb_ref[:, i:i + 1]
            out2 = jnp.maximum(acc2, neg * acc2)                        # f32

            if i == unit_num - 1:
                o_ref[...] = out2                 # single lane-dense f32 HBM write
            else:
                out = out2.astype(jnp.bfloat16)

    return kernel


def init_params(key, unit_num, channel=CHANNEL):
    """Deterministic synthetic parameters matching the module's shapes.

    unit_w / cat_w are stored as (in_channels, out_channels), i.e. a 1x1 conv on
    channels-last pixels is `x @ w + b` (the kernel uses the transposed form).
    """
    params = []
    for i in range(unit_num):
        key, k1, k2, k3, k4 = jax.random.split(key, 5)
        in_cat = (i + 2) * channel
        unit_w = jax.random.normal(k1, (channel, channel), jnp.float32) * (1.0 / channel ** 0.5)
        unit_b = jax.random.normal(k2, (channel,), jnp.float32) * 0.01
        cat_w = jax.random.normal(k3, (in_cat, channel), jnp.float32) * (1.0 / in_cat ** 0.5)
        cat_b = jax.random.normal(k4, (channel,), jnp.float32) * 0.01
        params.append((unit_w, unit_b, cat_w, cat_b))
    return params


def _choose_tile(M, target=1024):
    """Pixel tile: multiple of 128 (lane granule); >=2 grid steps when possible
    so v7x's two TensorCores both get work; capped at `target` (raise toward
    2048 on v6e's 128 MiB VMEM if desired)."""
    tm = max(128, min(target, M))
    if M >= 2 * 128:
        tm = min(tm, max(128, ((M // 2) // 128) * 128))
    tm = (tm // 128) * 128
    return tm


def dense_connection_forward(x_nchw, params, *, tm=None):
    """Reproduces DenseConnection.forward with one fused Pallas kernel.

    x_nchw: (N, C, H, W) float32, C == CHANNEL
    """
    n, c, h, w = x_nchw.shape
    assert c == CHANNEL, "DenseConnection fixes channel = 32"
    unit_num = len(params)
    C = c
    M = n * h * w

    # NCHW -> (C, N*H*W): channels on sublanes, pixels on lanes.
    x_t = jnp.transpose(x_nchw, (1, 0, 2, 3)).reshape(C, M)

    tm = _choose_tile(M) if tm is None else tm
    m_pad = ((M + tm - 1) // tm) * tm
    if m_pad != M:
        x_t = jnp.pad(x_t, ((0, 0), (0, m_pad - M)))   # padded pixels are row-independent
    x_bf = x_t.astype(jnp.bfloat16)
    grid = (m_pad // tm,)

    # Pack weights once: transposed, lane-dense, bf16 matmul operands; f32 biases.
    uw = jnp.concatenate([p[0].T for p in params], axis=1).astype(jnp.bfloat16)  # (C, unit_num*C)
    ub = jnp.stack([p[1] for p in params], axis=1).astype(jnp.float32)           # (C, unit_num)
    cw = jnp.concatenate([p[2].T for p in params], axis=1).astype(jnp.bfloat16)  # (C, sum (i+2)*C)
    cb = jnp.stack([p[3] for p in params], axis=1).astype(jnp.float32)           # (C, unit_num)
    cw_cols = C * (unit_num * (unit_num + 3) // 2)
    assert cw.shape == (C, cw_cols)

    kernel = _make_fused_kernel(unit_num, C)
    resident = pl.Buffered(1)   # constant index_map -> keep a single resident copy

    out_t = pl.pallas_call(
        kernel,
        out_shape=jax.ShapeDtypeStruct((C, m_pad), jnp.float32),
        grid_spec=pltpu.PrefetchScalarGridSpec(
            num_scalar_prefetch=0,
            grid=grid,
            in_specs=[
                pl.BlockSpec((C, tm), lambda i: (0, i)),                    # pixel tile
                pl.BlockSpec((C, unit_num * C), lambda i: (0, 0),
                             pipeline_mode=resident),                       # unit weights
                pl.BlockSpec((C, unit_num), lambda i: (0, 0),
                             pipeline_mode=resident),                       # unit biases
                pl.BlockSpec((C, cw_cols), lambda i: (0, 0),
                             pipeline_mode=resident),                       # conv1x1 weights
                pl.BlockSpec((C, unit_num), lambda i: (0, 0),
                             pipeline_mode=resident),                       # conv1x1 biases
            ],
            out_specs=pl.BlockSpec((C, tm), lambda i: (0, i)),
            scratch_shapes=[
                pltpu.VMEM(((unit_num + 1) * C, tm), jnp.bfloat16),          # growing `cat` slab
            ],
        ),
        compiler_params=pltpu.CompilerParams(
            dimension_semantics=("parallel",),        # pixel tiles shard across v7x's 2 TCs
            vmem_limit_bytes=32 * 1024 * 1024,        # explicit budget; fits v7x's 64 MiB VMEM
        ),
    )(x_bf, uw, ub, cw, cb)

    if m_pad != M:
        out_t = out_t[:, :M]
    # (C, N*H*W) -> NCHW
    return jnp.transpose(out_t.reshape(C, n, h, w), (1, 0, 2, 3)).astype(x_nchw.dtype)


def dense_connection_reference(x_nchw, params):
    """Plain-JAX f32 reference (same stand-in unit) for a numerical sanity check."""
    n, c, h, w = x_nchw.shape
    x2d = jnp.transpose(x_nchw, (0, 2, 3, 1)).reshape(n * h * w, c)

    def lrelu(v):
        return jnp.where(v >= 0.0, v, NEG_SLOPE * v)

    cat = [x2d]
    out = x2d
    for (unit_w, unit_b, cat_w, cat_b) in params:
        tmp = lrelu(out @ unit_w + unit_b)
        cat.append(tmp)
        out = lrelu(jnp.concatenate(cat, axis=1) @ cat_w + cat_b)
    return jnp.transpose(out.reshape(n, h, w, c), (0, 3, 1, 2))


if __name__ == "__main__":
    key = jax.random.PRNGKey(0)
    key, kx, kp = jax.random.split(key, 3)

    batch, height, width = 2, 16, 16
    unit_num = 4  # small for the test; module default global is 32

    x = jax.random.normal(kx, (batch, CHANNEL, height, width), jnp.float32)
    params = init_params(kp, unit_num)

    y = dense_connection_forward(x, params)
    jax.block_until_ready(y)
    assert y.shape == (batch, CHANNEL, height, width), y.shape
    assert bool(jnp.all(jnp.isfinite(y))), "non-finite output"

    # bf16-operand / f32-accumulate kernel vs f32 reference: loose tolerance.
    y_ref = dense_connection_reference(x, params)
    max_err = float(jnp.max(jnp.abs(y - y_ref)))
    assert max_err < 0.2, f"mismatch vs reference: max abs err {max_err}"

    print("KERNEL_OK")
</pallas_src>

<mosaic_0001>
module attributes {stable_mosaic.version = 11 : i64} {
  func.func @kernel(%arg0: i32, %arg1: memref<32x256xbf16, #tpu.memory_space<vmem>>, %arg2: memref<32x128xbf16, #tpu.memory_space<vmem>>, %arg3: memref<32x4xf32, #tpu.memory_space<vmem>>, %arg4: memref<32x448xbf16, #tpu.memory_space<vmem>>, %arg5: memref<32x4xf32, #tpu.memory_space<vmem>>, %arg6: memref<32x256xf32, #tpu.memory_space<vmem>>, %arg7: memref<160x256xbf16, #tpu.memory_space<vmem>>) attributes {dimension_semantics = [#tpu.dimension_semantics<parallel>], iteration_bounds = array<i64: 2>, scalar_prefetch = 0 : i64, scratch_operands = 1 : i64, tpu.core_type = #tpu.core_type<tc>, window_params = [{transform_indices = @transform_0, window_bounds = array<i64: 32, 256>}, {pipeline_mode = #tpu.pipeline_mode<synchronous>, transform_indices = @transform_1, window_bounds = array<i64: 32, 128>}, {pipeline_mode = #tpu.pipeline_mode<synchronous>, transform_indices = @transform_2, window_bounds = array<i64: 32, 4>}, {pipeline_mode = #tpu.pipeline_mode<synchronous>, transform_indices = @transform_3, window_bounds = array<i64: 32, 448>}, {pipeline_mode = #tpu.pipeline_mode<synchronous>, transform_indices = @transform_4, window_bounds = array<i64: 32, 4>}, {transform_indices = @transform_5, window_bounds = array<i64: 32, 256>}]} {
    %c0 = arith.constant 0 : index
    %c0_0 = arith.constant 0 : index
    %0 = vector.load %arg1[%c0, %c0_0] : memref<32x256xbf16, #tpu.memory_space<vmem>>, vector<32x256xbf16>
    %c0_1 = arith.constant 0 : index
    %c0_2 = arith.constant 0 : index
    %1 = vector.load %arg7[%c0_1, %c0_2] : memref<160x256xbf16, #tpu.memory_space<vmem>>, vector<32x256xbf16>
    tpu.vector_store %arg7[%c0_1, %c0_2], %0 {strides = array<i32>} : memref<160x256xbf16, #tpu.memory_space<vmem>>, vector<32x256xbf16>,
    %c0_3 = arith.constant 0 : index
    %c0_4 = arith.constant 0 : index
    %2 = vector.load %arg2[%c0_3, %c0_4] : memref<32x128xbf16, #tpu.memory_space<vmem>>, vector<32x32xbf16>
    %cst = arith.constant dense<0.000000e+00> : vector<32x256xf32>
    %3 = tpu.matmul %2, %0, %cst {dimension_numbers = #tpu.dot_dimension_numbers<[1], [0], [0], [1], [0, 0, 1, 1], [], []>} : vector<32x32xbf16>, vector<32x256xbf16>, vector<32x256xf32> -> vector<32x256xf32>
    %c0_5 = arith.constant 0 : index
    %c0_6 = arith.constant 0 : index
    %4 = vector.load %arg3[%c0_5, %c0_6] : memref<32x4xf32, #tpu.memory_space<vmem>>, vector<32x1xf32>
    %5 = vector.broadcast %4 : vector<32x1xf32> to vector<32x256xf32>
    %6 = arith.addf %3, %5 : vector<32x256xf32>
    %cst_7 = arith.constant 2.000000e-01 : f32
    %7 = vector.broadcast %cst_7 : f32 to vector<32x256xf32>
    %8 = arith.mulf %7, %6 : vector<32x256xf32>
    %9 = arith.maximumf %6, %8 : vector<32x256xf32>
    %10 = arith.truncf %9 : vector<32x256xf32> to vector<32x256xbf16>
    %c32 = arith.constant 32 : index
    %c0_8 = arith.constant 0 : index
    %11 = vector.load %arg7[%c32, %c0_8] : memref<160x256xbf16, #tpu.memory_space<vmem>>, vector<32x256xbf16>
    tpu.vector_store %arg7[%c32, %c0_8], %10 {strides = array<i32>} : memref<160x256xbf16, #tpu.memory_space<vmem>>, vector<32x256xbf16>,
    %c0_9 = arith.constant 0 : index
    %c0_10 = arith.constant 0 : index
    %12 = vector.load %arg4[%c0_9, %c0_10] : memref<32x448xbf16, #tpu.memory_space<vmem>>, vector<32x64xbf16>
    %c0_11 = arith.constant 0 : index
    %c0_12 = arith.constant 0 : index
    %13 = vector.load %arg7[%c0_11, %c0_12] : memref<160x256xbf16, #tpu.memory_space<vmem>>, vector<64x256xbf16>
    %cst_13 = arith.constant dense<0.000000e+00> : vector<32x256xf32>
    %14 = tpu.matmul %12, %13, %cst_13 {dimension_numbers = #tpu.dot_dimension_numbers<[1], [0], [0], [1], [0, 0, 1, 1], [], []>} : vector<32x64xbf16>, vector<64x256xbf16>, vector<32x256xf32> -> vector<32x256xf32>
    %c0_14 = arith.constant 0 : index
    %c0_15 = arith.constant 0 : index
    %15 = vector.load %arg5[%c0_14, %c0_15] : memref<32x4xf32, #tpu.memory_space<vmem>>, vector<32x1xf32>
    %16 = vector.broadcast %15 : vector<32x1xf32> to vector<32x256xf32>
    %17 = arith.addf %14, %16 : vector<32x256xf32>
    %cst_16 = arith.constant 2.000000e-01 : f32
    %18 = vector.broadcast %cst_16 : f32 to vector<32x256xf32>
    %19 = arith.mulf %18, %17 : vector<32x256xf32>
    %20 = arith.maximumf %17, %19 : vector<32x256xf32>
    %21 = arith.truncf %20 : vector<32x256xf32> to vector<32x256xbf16>
    %c0_17 = arith.constant 0 : index
    %c32_18 = arith.constant 32 : index
    %22 = vector.load %arg2[%c0_17, %c32_18] : memref<32x128xbf16, #tpu.memory_space<vmem>>, vector<32x32xbf16>
    %cst_19 = arith.constant dense<0.000000e+00> : vector<32x256xf32>
    %23 = tpu.matmul %22, %21, %cst_19 {dimension_numbers = #tpu.dot_dimension_numbers<[1], [0], [0], [1], [0, 0, 1, 1], [], []>} : vector<32x32xbf16>, vector<32x256xbf16>, vector<32x256xf32> -> vector<32x256xf32>
    %c0_20 = arith.constant 0 : index
    %c1 = arith.constant 1 : index
    %24 = vector.load %arg3[%c0_20, %c1] : memref<32x4xf32, #tpu.memory_space<vmem>>, vector<32x1xf32>
    %25 = vector.broadcast %24 : vector<32x1xf32> to vector<32x256xf32>
    %26 = arith.addf %23, %25 : vector<32x256xf32>
    %cst_21 = arith.constant 2.000000e-01 : f32
    %27 = vector.broadcast %cst_21 : f32 to vector<32x256xf32>
    %28 = arith.mulf %27, %26 : vector<32x256xf32>
    %29 = arith.maximumf %26, %28 : vector<32x256xf32>
    %30 = arith.truncf %29 : vector<32x256xf32> to vector<32x256xbf16>
    %c64 = arith.constant 64 : index
    %c0_22 = arith.constant 0 : index
    %31 = vector.load %arg7[%c64, %c0_22] : memref<160x256xbf16, #tpu.memory_space<vmem>>, vector<32x256xbf16>
    tpu.vector_store %arg7[%c64, %c0_22], %30 {strides = array<i32>} : memref<160x256xbf16, #tpu.memory_space<vmem>>, vector<32x256xbf16>,
    %c0_23 = arith.constant 0 : index
    %c64_24 = arith.constant 64 : index
    %32 = vector.load %arg4[%c0_23, %c64_24] : memref<32x448xbf16, #tpu.memory_space<vmem>>, vector<32x96xbf16>
    %c0_25 = arith.constant 0 : index
    %c0_26 = arith.constant 0 : index
    %33 = vector.load %arg7[%c0_25, %c0_26] : memref<160x256xbf16, #tpu.memory_space<vmem>>, vector<96x256xbf16>
    %cst_27 = arith.constant dense<0.000000e+00> : vector<32x256xf32>
    %34 = tpu.matmul %32, %33, %cst_27 {dimension_numbers = #tpu.dot_dimension_numbers<[1], [0], [0], [1], [0, 0, 1, 1], [], []>} : vector<32x96xbf16>, vector<96x256xbf16>, vector<32x256xf32> -> vector<32x256xf32>
    %c0_28 = arith.constant 0 : index
    %c1_29 = arith.constant 1 : index
    %35 = vector.load %arg5[%c0_28, %c1_29] : memref<32x4xf32, #tpu.memory_space<vmem>>, vector<32x1xf32>
    %36 = vector.broadcast %35 : vector<32x1xf32> to vector<32x256xf32>
    %37 = arith.addf %34, %36 : vector<32x256xf32>
    %cst_30 = arith.constant 2.000000e-01 : f32
    %38 = vector.broadcast %cst_30 : f32 to vector<32x256xf32>
    %39 = arith.mulf %38, %37 : vector<32x256xf32>
    %40 = arith.maximumf %37, %39 : vector<32x256xf32>
    %41 = arith.truncf %40 : vector<32x256xf32> to vector<32x256xbf16>
    %c0_31 = arith.constant 0 : index
    %c64_32 = arith.constant 64 : index
    %42 = vector.load %arg2[%c0_31, %c64_32] : memref<32x128xbf16, #tpu.memory_space<vmem>>, vector<32x32xbf16>
    %cst_33 = arith.constant dense<0.000000e+00> : vector<32x256xf32>
    %43 = tpu.matmul %42, %41, %cst_33 {dimension_numbers = #tpu.dot_dimension_numbers<[1], [0], [0], [1], [0, 0, 1, 1], [], []>} : vector<32x32xbf16>, vector<32x256xbf16>, vector<32x256xf32> -> vector<32x256xf32>
    %c0_34 = arith.constant 0 : index
    %c2 = arith.constant 2 : index
    %44 = vector.load %arg3[%c0_34, %c2] : memref<32x4xf32, #tpu.memory_space<vmem>>, vector<32x1xf32>
    %45 = vector.broadcast %44 : vector<32x1xf32> to vector<32x256xf32>
    %46 = arith.addf %43, %45 : vector<32x256xf32>
    %cst_35 = arith.constant 2.000000e-01 : f32
    %47 = vector.broadcast %cst_35 : f32 to vector<32x256xf32>
    %48 = arith.mulf %47, %46 : vector<32x256xf32>
    %49 = arith.maximumf %46, %48 : vector<32x256xf32>
    %50 = arith.truncf %49 : vector<32x256xf32> to vector<32x256xbf16>
    %c96 = arith.constant 96 : index
    %c0_36 = arith.constant 0 : index
    %51 = vector.load %arg7[%c96, %c0_36] : memref<160x256xbf16, #tpu.memory_space<vmem>>, vector<32x256xbf16>
    tpu.vector_store %arg7[%c96, %c0_36], %50 {strides = array<i32>} : memref<160x256xbf16, #tpu.memory_space<vmem>>, vector<32x256xbf16>,
    %c0_37 = arith.constant 0 : index
    %c160 = arith.constant 160 : index
    %52 = vector.load %arg4[%c0_37, %c160] : memref<32x448xbf16, #tpu.memory_space<vmem>>, vector<32x128xbf16>
    %c0_38 = arith.constant 0 : index
    %c0_39 = arith.constant 0 : index
    %53 = vector.load %arg7[%c0_38, %c0_39] : memref<160x256xbf16, #tpu.memory_space<vmem>>, vector<128x256xbf16>
    %cst_40 = arith.constant dense<0.000000e+00> : vector<32x256xf32>
    %54 = tpu.matmul %52, %53, %cst_40 {dimension_numbers = #tpu.dot_dimension_numbers<[1], [0], [0], [1], [0, 0, 1, 1], [], []>} : vector<32x128xbf16>, vector<128x256xbf16>, vector<32x256xf32> -> vector<32x256xf32>
    %c0_41 = arith.constant 0 : index
    %c2_42 = arith.constant 2 : index
    %55 = vector.load %arg5[%c0_41, %c2_42] : memref<32x4xf32, #tpu.memory_space<vmem>>, vector<32x1xf32>
    %56 = vector.broadcast %55 : vector<32x1xf32> to vector<32x256xf32>
    %57 = arith.addf %54, %56 : vector<32x256xf32>
    %cst_43 = arith.constant 2.000000e-01 : f32
    %58 = vector.broadcast %cst_43 : f32 to vector<32x256xf32>
    %59 = arith.mulf %58, %57 : vector<32x256xf32>
    %60 = arith.maximumf %57, %59 : vector<32x256xf32>
    %61 = arith.truncf %60 : vector<32x256xf32> to vector<32x256xbf16>
    %c0_44 = arith.constant 0 : index
    %c96_45 = arith.constant 96 : index
    %62 = vector.load %arg2[%c0_44, %c96_45] : memref<32x128xbf16, #tpu.memory_space<vmem>>, vector<32x32xbf16>
    %cst_46 = arith.constant dense<0.000000e+00> : vector<32x256xf32>
    %63 = tpu.matmul %62, %61, %cst_46 {dimension_numbers = #tpu.dot_dimension_numbers<[1], [0], [0], [1], [0, 0, 1, 1], [], []>} : vector<32x32xbf16>, vector<32x256xbf16>, vector<32x256xf32> -> vector<32x256xf32>
    %c0_47 = arith.constant 0 : index
    %c3 = arith.constant 3 : index
    %64 = vector.load %arg3[%c0_47, %c3] : memref<32x4xf32, #tpu.memory_space<vmem>>, vector<32x1xf32>
    %65 = vector.broadcast %64 : vector<32x1xf32> to vector<32x256xf32>
    %66 = arith.addf %63, %65 : vector<32x256xf32>
    %cst_48 = arith.constant 2.000000e-01 : f32
    %67 = vector.broadcast %cst_48 : f32 to vector<32x256xf32>
    %68 = arith.mulf %67, %66 : vector<32x256xf32>
    %69 = arith.maximumf %66, %68 : vector<32x256xf32>
    %70 = arith.truncf %69 : vector<32x256xf32> to vector<32x256xbf16>
    %c128 = arith.constant 128 : index
    %c0_49 = arith.constant 0 : index
    %71 = vector.load %arg7[%c128, %c0_49] : memref<160x256xbf16, #tpu.memory_space<vmem>>, vector<32x256xbf16>
    tpu.vector_store %arg7[%c128, %c0_49], %70 {strides = array<i32>} : memref<160x256xbf16, #tpu.memory_space<vmem>>, vector<32x256xbf16>,
    %c0_50 = arith.constant 0 : index
    %c288 = arith.constant 288 : index
    %72 = vector.load %arg4[%c0_50, %c288] : memref<32x448xbf16, #tpu.memory_space<vmem>>, vector<32x160xbf16>
    %c0_51 = arith.constant 0 : index
    %c0_52 = arith.constant 0 : index
    %73 = vector.load %arg7[%c0_51, %c0_52] : memref<160x256xbf16, #tpu.memory_space<vmem>>, vector<160x256xbf16>
    %cst_53 = arith.constant dense<0.000000e+00> : vector<32x256xf32>
    %74 = tpu.matmul %72, %73, %cst_53 {dimension_numbers = #tpu.dot_dimension_numbers<[1], [0], [0], [1], [0, 0, 1, 1], [], []>} : vector<32x160xbf16>, vector<160x256xbf16>, vector<32x256xf32> -> vector<32x256xf32>
    %c0_54 = arith.constant 0 : index
    %c3_55 = arith.constant 3 : index
    %75 = vector.load %arg5[%c0_54, %c3_55] : memref<32x4xf32, #tpu.memory_space<vmem>>, vector<32x1xf32>
    %76 = vector.broadcast %75 : vector<32x1xf32> to vector<32x256xf32>
    %77 = arith.addf %74, %76 : vector<32x256xf32>
    %cst_56 = arith.constant 2.000000e-01 : f32
    %78 = vector.broadcast %cst_56 : f32 to vector<32x256xf32>
    %79 = arith.mulf %78, %77 : vector<32x256xf32>
    %80 = arith.maximumf %77, %79 : vector<32x256xf32>
    %c0_57 = arith.constant 0 : index
    %c0_58 = arith.constant 0 : index
    %81 = vector.load %arg6[%c0_57, %c0_58] : memref<32x256xf32, #tpu.memory_space<vmem>>, vector<32x256xf32>
    tpu.vector_store %arg6[%c0_57, %c0_58], %80 {strides = array<i32>} : memref<32x256xf32, #tpu.memory_space<vmem>>, vector<32x256xf32>,
    return
  }
  func.func @transform_0(%arg0: i32) -> (i32, i32) {
    %c0_i32 = arith.constant 0 : i32
    %c0_i32_0 = arith.constant 0 : i32
    return %c0_i32, %arg0 : i32, i32
  }
  func.func @transform_1(%arg0: i32) -> (i32, i32) {
    %c0_i32 = arith.constant 0 : i32
    %c0_i32_0 = arith.constant 0 : i32
    %c0_i32_1 = arith.constant 0 : i32
    return %c0_i32, %c0_i32_0 : i32, i32
  }
  func.func @transform_2(%arg0: i32) -> (i32, i32) {
    %c0_i32 = arith.constant 0 : i32
    %c0_i32_0 = arith.constant 0 : i32
    %c0_i32_1 = arith.constant 0 : i32
    return %c0_i32, %c0_i32_0 : i32, i32
  }
  func.func @transform_3(%arg0: i32) -> (i32, i32) {
    %c0_i32 = arith.constant 0 : i32
    %c0_i32_0 = arith.constant 0 : i32
    %c0_i32_1 = arith.constant 0 : i32
    return %c0_i32, %c0_i32_0 : i32, i32
  }
  func.func @transform_4(%arg0: i32) -> (i32, i32) {
    %c0_i32 = arith.constant 0 : i32
    %c0_i32_0 = arith.constant 0 : i32
    %c0_i32_1 = arith.constant 0 : i32
    return %c0_i32, %c0_i32_0 : i32, i32
  }
  func.func @transform_5(%arg0: i32) -> (i32, i32) {
    %c0_i32 = arith.constant 0 : i32
    %c0_i32_0 = arith.constant 0 : i32
    return %c0_i32, %arg0 : i32, i32
  }
}

</mosaic_0001>

<bundles_post_ra>
// kernel: tpu_custom_call.1
= control target key start
LH: loop header
LB: loop body
LE: loop exit
PB: predicated region body
PF: predicated region fallthrough
CT: control target
= control target key end

     0   :  { %10 = vsyncpa [#allocation5], 0  ;;  %s2772_s0 = inlined_call_operand.vmem [shape: bf16[32,512], index: 0, kind: input, shape index: {}]   ;;  %s2773_s1 = inlined_call_operand.hbm [shape: bf16[32,128], index: 1, kind: input, shape index: {}]   ;;  %s2774_s2 = inlined_call_operand.vmem [shape: f32[32,4], index: 2, kind: input, shape index: {}]   ;;  %s2775_s3 = inlined_call_operand.hbm [shape: bf16[32,448], index: 3, kind: input, shape index: {}]   ;;  %s2776_s4 = inlined_call_operand.vmem [shape: f32[32,4], index: 4, kind: input, shape index: {}]   ;;  %s2777_s5 = inlined_call_operand.hbm [shape: f32[32,512], index: 5, kind: output, shape index: {}]  }
   0x1   :  { %11 = vsyncpa [#allocation8], 0 }
   0x2   :  { %12 = vsyncpa [#allocation6], 0 }
   0x3   :  { %14 = vsyncpa [#allocation6 + $0x1], 0  ;;  %s2441_s18 = smov 0   ;;  %s2443_s19 = smov 0  }
   0x4   :  { %s2445_s20 = smov 0   ;;  %s2447_s21 = smov 0  }
   0x5 LB: > { %s2462_s22 = sadd.s32 4294967295, %s2393_s21   ;;  %s1715_s23 = sadd.s32 4294967294, %s2393_s21   ;;  %s2393_s21 = sphi %s2447_s21, %s2785_s21   ;;  %s2389_s20 = sphi %s2445_s20, %s2784_s20   ;;  %s2385_s19 = sphi %s2443_s19, %s2783_s19   ;;  %s2381_s18 = sphi %s2441_s18, %s2782_s18  }
   0x6   : > { %s2466_s24 = sadd.s32 1, %s2393_s21   ;;  %s27_s25 = sadd.s32 1, %s2389_s20 }
   0x7   : > { %s24_s26 = ssub.s32 %s2393_s21, %s2466_s24  ;;  %p34_p0 = scmp.ne.s32.totalorder %s2389_s20, %s2385_s19 }
   0x8   : > { %p25_p1 = scmp.eq.s32.totalorder %s24_s26, 0  ;;  %p35_p2 = scmp.eq.s32.totalorder %s2393_s21, 0 }
   0x9   : > { %p148_p3 = scmp.eq.s32.totalorder %s2462_s22, 1  ;;  %p153_p4 = scmp.ne.s32.totalorder %s2385_s19, %s2381_s18 }
   0xa   : > { %s2478_s27 = scalar_select %p25_p1, %s2389_s20, %s27_s25  }
   0xb   : > { %p2480_p5 = por %p35_p2, %p34_p0  ;;  %p2484_p6 = por %p148_p3, %p34_p0 }
   0xc   : > { %p154_p7 = scmp.eq.s32.totalorder %s1715_s23, 1  ;;  %p1716_p8 = scmp.ge.s32.totalorder %s2393_s21, 1 }
   0xd   : > { %p161_p9 = scmp.lt.s32.totalorder %s2393_s21, 3  ;;  %p2198_p11 = scmp.eq.s32.totalorder %s2462_s22, 0 }
   0xe   : > { %p2490_p10 = por %p154_p7, %p153_p4  ;;  %s172_s9 = sshll.u32 %s2773_s1, 4  ;;  %s173_s9 = int_to_ptr.hbm [resolvable:$true] %s172_s9 }
   0xf   : > { %p2495_p12 = pnand %p1716_p8, %p161_p9  ;;  %s2395_s10 = smov [#allocation4]  }
  0x10   : > { %s174_s11 = sshll.u32 %s2395_s10, 4  ;;  %s189_s14 = sshll.u32 %s2775_s3, 4  ;;  %s175_s11 = int_to_ptr.vmem [resolvable:$true] %s174_s11  ;;  %s190_s14 = int_to_ptr.hbm [resolvable:$true] %s189_s14 }
  0x11   : > { %p2187_p13 = pneg %p2495_p12  ;;  %s2396_s15 = smov 64  }
  0x12   : > { %s2397_s16 = smov 4   ;;  %s2398_s17 = smov [#allocation7]  }
  0x13   : > { %p2188_p0 = pnand %p2198_p11, %p2187_p13  ;;  %s191_s23 = sshll.u32 %s2398_s17, 4  ;;  %s192_s23 = int_to_ptr.vmem [resolvable:$true] %s191_s23 }
  0x14   : > { %s2399_s25 = smov 256   ;;  %s2400_s26 = smov 16  }
  0x15   : > { %2190 = dma.hbm_to_vmem [thread:$0]  (!%p2188_p0), %s173_s9, 256, %s175_s11, [#allocation5], %s2396_s15, %s2396_s15, %s2397_s16  }
  0x16   : > { %2193 = dma.hbm_to_vmem [thread:$0]  (!%p2188_p0), %s190_s14, 1024, %s192_s23, [#allocation8], %s2399_s25, %s2399_s25, %s2400_s26  }
  0x17   : > { %p1719_p1 = scmp.ge.s32.totalorder %s2393_s21, 2 }
  0x19   : > { %204 = sbr.rel (%p1719_p1) target bundleno = 38 (0x26), region = 32 }
  0x1e   : > { %207 = sbr.rel (!%p2480_p5) target bundleno = 38 (0x26), region = 36  ;;  %s209_s7 = sand.u32 (%p2480_p5), 1, %s2389_s20  }
  0x1f   : > { %s2089_s8 = sshll.u32 (%p2480_p5), %s2393_s21, 3  ;;  %s1720_s10 = sshll.u32 (%p2480_p5), %s209_s7, 5 }
  0x20   : > { %s214_s12 = scalar_lea.vmem (%p2480_p5), %s2772_s0, %s2089_s8  ;;  %s211_s13 = scalar_lea.vmem (%p2480_p5), [#allocation3], %s1720_s10 }
  0x21   : > { %v249_v0 = vld [vmem:[%s214_s12] sm:$0xff] (%p2480_p5)  ;;  %v251_v1 = vld [vmem:[%s214_s12 + $0x10] sm:$0xff] (%p2480_p5) }
  0x22   : > { %v253_v2 = vld [vmem:[%s214_s12 + $0x20] sm:$0xff] (%p2480_p5)  ;;  %250 = vst [vmem:[%s211_s13] sm:$0xff] (%p2480_p5), %v249_v0  ;;  %v255_v3 = vld [vmem:[%s214_s12 + $0x30] sm:$0xff] (%p2480_p5) }
  0x23   : > { %252 = vst [vmem:[%s211_s13 + $0x8] sm:$0xff] %v251_v1 }
  0x24   : > { %254 = vst [vmem:[%s211_s13 + $0x10] sm:$0xff] %v253_v2 }
  0x25   : > { %256 = vst [vmem:[%s211_s13 + $0x18] sm:$0xff] %v255_v3 }
  0x26 PF: > { %265 = sbr.rel (%p2495_p12) target bundleno = 1476 (0x5c4), region = 74  ;;  %s2522_s28 = sand.u32 (!%p2495_p12), 1, %s2385_s19  }
  0x27   : > { %s1724_s14 = sshll.u32 (!%p2495_p12), %s2522_s28, 5 }
  0x28   : > { %s2525_s15 = scalar_lea.vmem (!%p2495_p12), [#allocation3], %s1724_s14 }
  0x2b   : > { %2368 = dma.done.wait (%p2198_p11), [#allocation5], 256  }
  0x2c   : > { %2370 = vsyncadd (%p2198_p11), [#allocation5], 4294967040 }
  0x2d   : > { %2372 = dma.done.wait (%p2198_p11), [#allocation8], 1024  }
  0x2e   : > { %2374 = vsyncadd (%p2198_p11), [#allocation8], 4294966272  ;;  %v2401_v4 = vmov 0   ;;  %v1746_v5 = vld [vmem:[%s2525_s15 + $0x10] sm:$0xf]  ;;  %v2551_v17 = vld [vmem:[%s2774_s2] sm:$0xff] }
  0x2f   : > { %2251 = vset.pattern.permute.xlu0 %v2401_v4  ;;  %2252 = vset.pattern.permute.xlu1 %v2401_v4  ;;  %v2093_v6 = vld [vmem:[%s2525_s15 + $0x14] sm:$0xf0]  ;;  %v2092_v7 = vld [vmem:[%s2525_s15 + $0x14] sm:$0xf]  ;;  %v1748_v9 = vld [vmem:[%s2525_s15 + $0x18] sm:$0xf0] }
  0x30   : > { %2253 = vset.pattern.permute.xlu2 %v2401_v4  ;;  %v1747_v8 = vor.u32 %v2093_v6, %v1746_v5  ;;  %v1738_v10 = vld [vmem:[%s2525_s15] sm:$0xf]  ;;  %v2091_v11 = vld [vmem:[%s2525_s15 + $0x4] sm:$0xf0]  ;;  %v1751_v12 = vor.u32 %v2092_v7, %v1748_v9  ;;  %v2090_v13 = vld [vmem:[%s2525_s15 + $0x4] sm:$0xf]  ;;  %326 = vperm.xlu1 %2252, %v2551_v17  }
  0x31   : > { %v1740_v14 = vld [vmem:[%s2525_s15 + $0x8] sm:$0xf0]  ;;  %v1739_v15 = vor.u32 %v2091_v11, %v1738_v10  ;;  %v2546_v16 = vld [vmem:[%s2774_s2 + $0x10] sm:$0xff]  ;;  %v2094_v19 = vld [vmem:[#allocation4] sm:$0xff]  ;;  %vm374_vm0 = vcmask 261120   ;;  %vm529_vm1 = vcmask 523264  }
  0x32   : > { %387 = vmatpush.bf16.msra.mxu0 %v1747_v8  ;;  %2173 = vmatpush.bf16.msra.mxu2 %v1747_v8  ;;  %v1743_v18 = vor.u32 %v2090_v13, %v1740_v14  ;;  %v2095_v20 = vld [vmem:[#allocation4 + $0x8] sm:$0xff]  ;;  %v2560_v21 = vld [vmem:[%s2774_s2 + $0x18] sm:$0xff]  ;;  %v2574_v23 = vld [vmem:[%s2776_s4] sm:$0xff]  ;;  %s2404_s17 = smov 64   ;;  %vm831_vm2 = vcmask 785408   ;;  %s2407_s26 = smov 32  }
  0x33   : > { %406 = vmatpush.bf16.msra.mxu1 %v1751_v12  ;;  %2175 = vmatpush.bf16.msra.mxu3 %v1751_v12  ;;  %v2565_v22 = vld [vmem:[%s2774_s2 + $0x8] sm:$0xff]  ;;  %v310_v26 = vld [vmem:[%s2525_s15 + $0x10] sm:$0xff]  ;;  %v311_v27 = vld [vmem:[%s2525_s15 + $0x18] sm:$0xff]  ;;  %s2172_s8 = sshll.u32 %s2462_s22, 4  ;;  %s1610_s22 = scalar_lea.sflag [#allocation6], %s2522_s28 }
  0x34   : > { %336 = vperm.xlu0 %2251, %v2546_v16   ;;  %v2579_v24 = vld [vmem:[%s2776_s4 + $0x8] sm:$0xff]  ;;  %314 = vst [vmem:[#allocation2 + $0x10] sm:$0xff] %v310_v26  ;;  %v308_v33 = vld [vmem:[%s2525_s15] sm:$0xff]  ;;  %s1621_s11 = scalar_lea.hbm %s2777_s5, %s2172_s8 }
  0x35   : > { %315 = vst [vmem:[#allocation2 + $0x18] sm:$0xff] %v311_v27  ;;  %v309_v34 = vld [vmem:[%s2525_s15 + $0x8] sm:$0xff]  ;;  %s2402_s15 = smov 96   ;;  %s1624_s13 = sshll.u32 %s1621_s11, 4  ;;  %s1625_s13 = int_to_ptr.hbm [resolvable:$true] %s1624_s13 }
  0x36   : > { %388 = vmatpush.bf16.msra.mxu0 %v1739_v15  ;;  %2174 = vmatpush.bf16.msra.mxu2 %v1739_v15  ;;  %312 = vst [vmem:[#allocation2] sm:$0xff] %v308_v33  ;;  %v2590_v15 = vld [vmem:[%s2776_s4 + $0x10] sm:$0xff]  ;;  %s2337_s14 = sshra.s32 %s1625_s13, 4  ;;  %s2338_s14 = int_to_ptr.hbm [resolvable:$true] %s2337_s14 }
  0x37   : > { %407 = vmatpush.bf16.msra.mxu1 %v1743_v18  ;;  %2176 = vmatpush.bf16.msra.mxu3 %v1743_v18  ;;  %313 = vst [vmem:[#allocation2 + $0x8] sm:$0xff] %v309_v34  ;;  %v2107_v18 = vld [vmem:[#allocation4 + $0x8] sm:$0xff]  ;;  %p2344_p5 = scmp.lt.s32.totalorder %s2338_s14, %s2777_s5 }
  0x38   : > { %331 = vperm.xlu1 %2252, %v2565_v22   ;;  %471 = vperm.xlu2 %2253, %v2590_v15  }
  0x39   : > { %1752 = vmatmul.msk.bf16.vlgmr.msra.gmra.mxu0 %vm374_vm0, %v2094_v19  ;;  %1753 = vmatmul.msk.bf16.vlgmr.msra.gmra.mxu2 %vm374_vm0, %v2095_v20 }
  0x3a   : > { %1754 = vmatmul.msk.bf16.vlgmr.msra.gmra.mxu1 %vm374_vm0, %v2094_v19  ;;  %1755 = vmatmul.msk.bf16.vlgmr.msra.gmra.mxu3 %vm374_vm0, %v2095_v20 }
  0x3b   : > { %v1774_v19 = vld [vmem:[#allocation2 + $0x10] sm:$0xf] }
  0x3c   : > { %341 = vperm.xlu0 %2251, %v2560_v21   ;;  %v2101_v20 = vld [vmem:[#allocation2 + $0x14] sm:$0xf0]  ;;  %v1776_v26 = vld [vmem:[#allocation2 + $0x18] sm:$0xf0] }
  0x3d   : > { %v2098_v33 = vld [vmem:[#allocation2 + $0x4] sm:$0xf] }
  0x3e   : > { %v1768_v34 = vld [vmem:[#allocation2 + $0x8] sm:$0xf0] }
  0x40   : > { %466 = vperm.xlu1 %2252, %v2579_v24  }
  0x44   : > { %461 = vperm.xlu0 %2251, %v2574_v23  }
  0x4c   : > { %634 = vrot.lane.b32.xlu0 %v2107_v18, %s2402_s15 }
  0xa2   : > { %v327_v25 = vpop.permute.xlu1 %326 }
  0xa6   : > { %v337_v35 = vpop.permute.xlu0 %336 }
  0xaa   : > { %v332_v43 = vpop.permute.xlu1 %331 }
  0xae   : > { %v342_v56 = vpop.permute.xlu0 %341 }
  0xb6   : > { %v390_v28 = vpop.f32.mrf.mxu0 }
  0xb7   : > { %v391_v29 = vadd.f32 %v390_v28, %v327_v25  ;;  %v409_v30 = vpop.f32.mrf.mxu1 }
  0xb8   : > { %v410_v31 = vadd.f32 %v409_v30, %v327_v25  ;;  %v2100_v25 = vld [vmem:[#allocation2 + $0x14] sm:$0xf] }
  0xb9   : > { %v419_v32 = vmul.f32 0.2, %v391_v29  ;;  %v1779_v30 = vor.u32 %v2100_v25, %v1776_v26 }
  0xba   : > { %v420_v36 = vmul.f32 0.2, %v410_v31 }
  0xbb   : > { %v427_v37 = vmax.f32 %v391_v29, %v419_v32  ;;  %v1775_v29 = vor.u32 %v2101_v20, %v1774_v19  ;;  %v2099_v32 = vld [vmem:[#allocation2 + $0x4] sm:$0xf0] }
  0xbc   : > { %v428_v38 = vmax.f32 %v410_v31, %v420_v36  ;;  %v395_v39 = vpop.f32.mrf.mxu2  ;;  %v1766_v31 = vld [vmem:[#allocation2] sm:$0xf] }
  0xbd   : > { %v396_v40 = vadd.f32 %v395_v39, %v337_v35  ;;  %v414_v41 = vpop.f32.mrf.mxu3  ;;  %v1767_v36 = vor.u32 %v2099_v32, %v1766_v31  ;;  %v2096_v39 = vld [vmem:[#allocation7 + $0xc] sm:$0xf0] }
  0xbe   : > { %v435_v42 = vpack.c.bf16 %v428_v38, %v427_v37  ;;  %v415_v44 = vadd.f32 %v414_v41, %v337_v35  ;;  %v392_v45 = vpop.f32.mrf.mxu0  ;;  %v2597_v35 = vld [vmem:[%s2776_s4 + $0x18] sm:$0xff]  ;;  %v1771_v37 = vor.u32 %v2098_v33, %v1768_v34  ;;  %v1758_v38 = vld [vmem:[#allocation7] sm:$0xf]  ;;  %v2106_v41 = vld [vmem:[#allocation4] sm:$0xff] }
  0xbf   : > { %v423_v46 = vmul.f32 0.2, %v396_v40  ;;  %v393_v47 = vadd.f32 %v392_v45, %v332_v43  ;;  %v411_v48 = vpop.f32.mrf.mxu1  ;;  %476 = vperm.xlu2 %2253, %v2597_v35   ;;  %v2111_v31 = vld [vmem:[#allocation7 + $0x2c] sm:$0xf0] }
  0xc0   : > { %439 = vst [vmem:[#allocation2 + $0x20] sm:$0xff] %v435_v42  ;;  %v424_v49 = vmul.f32 0.2, %v415_v44  ;;  %v412_v50 = vadd.f32 %v411_v48, %v332_v43  ;;  %v1762_v42 = vld [vmem:[#allocation7 + $0x20] sm:$0xf] }
  0xc1   : > { %v431_v51 = vmax.f32 %v396_v40, %v423_v46  ;;  %v421_v52 = vmul.f32 0.2, %v393_v47  ;;  %v1759_v40 = vor.u32 %v2096_v39, %v1758_v38  ;;  %v2097_v43 = vld [vmem:[#allocation7 + $0x2c] sm:$0xf0] }
  0xc2   : > { %v432_v53 = vmax.f32 %v415_v44, %v424_v49  ;;  %v422_v54 = vmul.f32 0.2, %v412_v50  ;;  %v1763_v44 = vor.u32 %v2097_v43, %v1762_v42 }
  0xc3   : > { %v429_v55 = vmax.f32 %v393_v47, %v421_v52  ;;  %v2403_v47 = vmov 1  }
  0xc4   : > { %v437_v57 = vpack.c.bf16 %v432_v53, %v431_v51  ;;  %v430_v58 = vmax.f32 %v412_v50, %v422_v54  ;;  %v397_v59 = vpop.f32.mrf.mxu2  ;;  %2254 = vset.pattern.permute.xlu1 %v2403_v47  ;;  %2256 = vset.pattern.permute.xlu0 %v2403_v47  ;;  %v472_v50 = vpop.permute.xlu2 %471  ;;  %v2108_v53 = vld [vmem:[#allocation7 + $0x4] sm:$0xf]  ;;  %v1816_v54 = vld [vmem:[#allocation7 + $0x10] sm:$0xf0] }
  0xc5   : > { %v398_v60 = vadd.f32 %v397_v59, %v342_v56  ;;  %v416_v61 = vpop.f32.mrf.mxu3  ;;  %614 = vperm.xlu1 %2254, %v2546_v16   ;;  %604 = vperm.xlu0 %2256, %v2551_v17  }
  0xc6   : > { %441 = vst [vmem:[#allocation2 + $0x30] sm:$0xff] %v437_v57  ;;  %v436_v62 = vpack.c.bf16 %v430_v58, %v429_v55  ;;  %v417_v63 = vadd.f32 %v416_v61, %v342_v56  ;;  %v1819_v56 = vor.u32 %v2108_v53, %v1816_v54  ;;  %v467_v57 = vpop.permute.xlu1 %466 }
  0xc7   : > { %v425_v0 = vmul.f32 0.2, %v398_v60  ;;  %v1782_v11 = vld [vmem:[#allocation2 + $0x20] sm:$0xf]  ;;  %v2102_v13 = vld [vmem:[#allocation2 + $0x24] sm:$0xf]  ;;  %632 = vrot.lane.b32.xlu2 %v2106_v41, %s2402_s15 }
  0xc8   : > { %440 = vst [vmem:[#allocation2 + $0x28] sm:$0xff] %v436_v62  ;;  %v426_v1 = vmul.f32 0.2, %v417_v63  ;;  %2255 = vset.pattern.permute.xlu2 %v2403_v47 }
  0xc9   : > { %v433_v2 = vmax.f32 %v398_v60, %v425_v0  ;;  %v462_v60 = vpop.permute.xlu0 %461 }
  0xca   : > { %v434_v3 = vmax.f32 %v417_v63, %v426_v1 }
  0xcc   : > { %v438_v4 = vpack.c.bf16 %v434_v3, %v433_v2 }
  0xcd   : > { %v1790_v5 = vld [vmem:[#allocation2 + $0x30] sm:$0xf]  ;;  %v2104_v7 = vld [vmem:[#allocation2 + $0x34] sm:$0xf]  ;;  %609 = vperm.xlu1 %2254, %v2565_v22  }
  0xce   : > { %442 = vst [vmem:[#allocation2 + $0x38] sm:$0xff] %v438_v4  ;;  %v2110_v4 = vld [vmem:[#allocation7 + $0x24] sm:$0xf] }
  0xcf   : > { %v2103_v12 = vld [vmem:[#allocation2 + $0x24] sm:$0xf0]  ;;  %v1784_v14 = vld [vmem:[#allocation2 + $0x28] sm:$0xf0]  ;;  %619 = vperm.xlu2 %2255, %v2560_v21  }
  0xd0   : > { %v1783_v27 = vor.u32 %v2103_v12, %v1782_v11  ;;  %v1787_v28 = vor.u32 %v2102_v13, %v1784_v14  ;;  %v2109_v11 = vld [vmem:[#allocation7 + $0xc] sm:$0xf0] }
  0xd1   : > { %v635_v43 = vpop.permute.xlu0 %634 }
  0xd5   : > { %v2105_v6 = vld [vmem:[#allocation2 + $0x34] sm:$0xf0]  ;;  %v1792_v8 = vld [vmem:[#allocation2 + $0x38] sm:$0xf0]  ;;  %762 = vrot.lane.b32.xlu1 %v1819_v56, %s2404_s17 }
  0xd6   : > { %v1791_v9 = vor.u32 %v2105_v6, %v1790_v5  ;;  %v1795_v10 = vor.u32 %v2104_v7, %v1792_v8  ;;  %v1824_v5 = vld [vmem:[#allocation7 + $0x30] sm:$0xf0]  ;;  %v1814_v6 = vld [vmem:[#allocation7] sm:$0xf] }
  0xd7   : > { %v1815_v13 = vor.u32 %v2109_v11, %v1814_v6 }
  0xd8   : > { %540 = vmatpush.bf16.msrb.mxu2 %v1791_v9  ;;  %559 = vmatpush.bf16.msrb.mxu3 %v1795_v10  ;;  %v1827_v10 = vor.u32 %v2110_v4, %v1824_v5 }
  0xd9   : > { %760 = vrot.lane.b32.xlu2 %v1815_v13, %s2404_s17 }
  0xda   : > { %766 = vrot.lane.b32.xlu0 %v1827_v10, %s2404_s17 }
  0xdc   : > { %541 = vmatpush.bf16.msrb.mxu2 %v1783_v27  ;;  %560 = vmatpush.bf16.msrb.mxu3 %v1787_v28 }
  0xdd   : > { %736 = vperm.xlu1 %2254, %v2590_v15  }
  0xe0   : > { %542 = vmatpush.bf16.msrb.mxu2 %v1775_v29  ;;  %561 = vmatpush.bf16.msrb.mxu3 %v1779_v30  ;;  %v1822_v30 = vld [vmem:[#allocation7 + $0x20] sm:$0xf] }
  0xe2   : > { %726 = vperm.xlu0 %2256, %v2574_v23  }
  0xe4   : > { %543 = vmatpush.bf16.msrb.mxu2 %v1767_v36  ;;  %562 = vmatpush.bf16.msrb.mxu3 %v1771_v37  ;;  %v1823_v37 = vor.u32 %v2111_v31, %v1822_v30 }
  0xe5   : > { %731 = vperm.xlu1 %2254, %v2579_v24  }
  0xe6   : > { %764 = vrot.lane.b32.xlu2 %v1823_v37, %s2404_s17 }
  0xe7   : > { %1796 = vmatmul.msk.bf16.vlgmr.msrb.gmra.mxu2 %vm529_vm1, %v1759_v40  ;;  %1798 = vmatmul.msk.bf16.vlgmr.msrb.gmra.mxu3 %vm529_vm1, %v1759_v40 }
  0xee   : > { %741 = vperm.xlu2 %2255, %v2597_v35  }
  0xf7   : > { %1797 = vmatmul.msk.bf16.gmra.mxu2 %vm529_vm1, %v1763_v44  ;;  %1799 = vmatmul.msk.bf16.gmra.mxu3 %vm529_vm1, %v1763_v44 }
 0x119   : > { %v477_v62 = vpop.permute.xlu2 %476 }
 0x121   : > { %v633_v42 = vpop.permute.xlu2 %632 }
 0x137   : > { %v615_v44 = vpop.permute.xlu1 %614 }
 0x13f   : > { %v610_v54 = vpop.permute.xlu1 %609 }
 0x16a   : > { %v545_v45 = vpop.f32.mrf.mxu2  ;;  %v564_v46 = vpop.f32.mrf.mxu3 }
 0x16b   : > { %v546_v0 = vadd.f32 %v545_v45, %v462_v60  ;;  %v565_v1 = vadd.f32 %v564_v46, %v462_v60  ;;  %v605_v45 = vpop.permute.xlu0 %604 }
 0x16d   : > { %v574_v20 = vmul.f32 0.2, %v546_v0  ;;  %v575_v25 = vmul.f32 0.2, %v565_v1 }
 0x16f   : > { %v582_v38 = vmax.f32 %v546_v0, %v574_v20  ;;  %v583_v39 = vmax.f32 %v565_v1, %v575_v25 }
 0x172   : > { %v547_v48 = vpop.f32.mrf.mxu2  ;;  %v566_v49 = vpop.f32.mrf.mxu3 }
 0x173   : > { %v548_v59 = vadd.f32 %v547_v48, %v467_v57  ;;  %v567_v61 = vadd.f32 %v566_v49, %v467_v57 }
 0x175   : > { %v576_v12 = vmul.f32 0.2, %v548_v59  ;;  %v577_v14 = vmul.f32 0.2, %v567_v61 }
 0x177   : > { %v584_v32 = vmax.f32 %v548_v59, %v576_v12  ;;  %v585_v33 = vmax.f32 %v567_v61, %v577_v14 }
 0x179   : > { %v590_v40 = vpack.c.bf16 %v584_v32, %v582_v38  ;;  %v591_v41 = vpack.c.bf16 %v585_v33, %v583_v39 }
 0x17a   : > { %v550_v51 = vpop.f32.mrf.mxu2  ;;  %v569_v52 = vpop.f32.mrf.mxu3 }
 0x17b   : > { %v551_v55 = vadd.f32 %v550_v51, %v472_v50  ;;  %v570_v58 = vadd.f32 %v569_v52, %v472_v50 }
 0x17d   : > { %v578_v63 = vmul.f32 0.2, %v551_v55  ;;  %v579_v7 = vmul.f32 0.2, %v570_v58 }
 0x17f   : > { %v586_v26 = vmax.f32 %v551_v55, %v578_v63  ;;  %v587_v27 = vmax.f32 %v570_v58, %v579_v7 }
 0x182   : > { %v552_v2 = vpop.f32.mrf.mxu2  ;;  %v571_v3 = vpop.f32.mrf.mxu3 }
 0x183   : > { %v553_v8 = vadd.f32 %v552_v2, %v477_v62  ;;  %v572_v9 = vadd.f32 %v571_v3, %v477_v62 }
 0x185   : > { %v580_v18 = vmul.f32 0.2, %v553_v8  ;;  %v581_v19 = vmul.f32 0.2, %v572_v9 }
 0x187   : > { %v588_v28 = vmax.f32 %v553_v8, %v580_v18  ;;  %v589_v29 = vmax.f32 %v572_v9, %v581_v19  ;;  %v620_v9 = vpop.permute.xlu2 %619 }
 0x189   : > { %v592_v34 = vpack.c.bf16 %v588_v28, %v586_v26  ;;  %v593_v36 = vpack.c.bf16 %v589_v29, %v587_v27 }
 0x18b   : > { %648 = vmatpush.bf16.msrb.mxu0 %v592_v34  ;;  %667 = vmatpush.bf16.msrb.mxu1 %v593_v36 }
 0x18f   : > { %649 = vmatpush.bf16.msrb.mxu0 %v590_v40  ;;  %668 = vmatpush.bf16.msrb.mxu1 %v591_v41  ;;  %v2119_v40 = vld [vmem:[#allocation2 + $0x34] sm:$0xf0]  ;;  %v1856_v41 = vld [vmem:[#allocation2 + $0x38] sm:$0xf0] }
 0x192   : > { %1808 = vmatmul.msk.bf16.vlgmr.msrb.gmra.mxu0 %vm374_vm0, %v633_v42  ;;  %1810 = vmatmul.msk.bf16.vlgmr.msrb.gmra.mxu1 %vm374_vm0, %v633_v42  ;;  %v1854_v42 = vld [vmem:[#allocation2 + $0x30] sm:$0xf] }
 0x1a2   : > { %1809 = vmatmul.msk.bf16.gmra.mxu0 %vm374_vm0, %v635_v43  ;;  %1811 = vmatmul.msk.bf16.gmra.mxu1 %vm374_vm0, %v635_v43  ;;  %v2118_v43 = vld [vmem:[#allocation2 + $0x34] sm:$0xf] }
 0x20f   : > { %v651_v46 = vpop.f32.mrf.mxu0  ;;  %v670_v47 = vpop.f32.mrf.mxu1 }
 0x210   : > { %v652_v48 = vadd.f32 %v651_v46, %v605_v45  ;;  %v671_v49 = vadd.f32 %v670_v47, %v605_v45  ;;  %v1859_v45 = vor.u32 %v2118_v43, %v1856_v41  ;;  %v1846_v46 = vld [vmem:[#allocation2 + $0x20] sm:$0xf]  ;;  %v2117_v47 = vld [vmem:[#allocation2 + $0x24] sm:$0xf0] }
 0x212   : > { %v680_v50 = vmul.f32 0.2, %v652_v48  ;;  %v681_v51 = vmul.f32 0.2, %v671_v49 }
 0x214   : > { %v688_v52 = vmax.f32 %v652_v48, %v680_v50  ;;  %v689_v53 = vmax.f32 %v671_v49, %v681_v51  ;;  %v2116_v48 = vld [vmem:[#allocation2 + $0x24] sm:$0xf]  ;;  %v1848_v49 = vld [vmem:[#allocation2 + $0x28] sm:$0xf0] }
 0x215   : > { %v2125_v50 = vld [vmem:[#allocation4 + $0x8] sm:$0xff]  ;;  %v2124_v51 = vld [vmem:[#allocation4] sm:$0xff] }
 0x216   : > { %v696_v55 = vpack.c.bf16 %v689_v53, %v688_v52  ;;  %v1838_v52 = vld [vmem:[#allocation2 + $0x10] sm:$0xf]  ;;  %v2115_v53 = vld [vmem:[#allocation2 + $0x14] sm:$0xf0]  ;;  %936 = vrot.lane.b32.xlu0 %v2125_v50, %s2404_s17  ;;  %934 = vrot.lane.b32.xlu2 %v2124_v51, %s2404_s17  ;;  %s2343_s17 = scalar_lea.hbm %s2777_s5, 128 }
 0x217   : > { %v653_v56 = vpop.f32.mrf.mxu0  ;;  %v672_v57 = vpop.f32.mrf.mxu1 }
 0x218   : > { %700 = vst [vmem:[#allocation2 + $0x40] sm:$0xff] %v696_v55  ;;  %v654_v58 = vadd.f32 %v653_v56, %v610_v54  ;;  %v673_v59 = vadd.f32 %v672_v57, %v610_v54  ;;  %v2114_v54 = vld [vmem:[#allocation2 + $0x14] sm:$0xf]  ;;  %v1840_v55 = vld [vmem:[#allocation2 + $0x18] sm:$0xf0]  ;;  %v1847_v56 = vor.u32 %v2117_v47, %v1846_v46  ;;  %v1851_v57 = vor.u32 %v2116_v48, %v1848_v49 }
 0x21a   : > { %v682_v60 = vmul.f32 0.2, %v654_v58  ;;  %v683_v61 = vmul.f32 0.2, %v673_v59 }
 0x21c   : > { %v690_v62 = vmax.f32 %v654_v58, %v682_v60  ;;  %v691_v63 = vmax.f32 %v673_v59, %v683_v61  ;;  %v1839_v58 = vor.u32 %v2115_v53, %v1838_v52  ;;  %v1843_v59 = vor.u32 %v2114_v54, %v1840_v55  ;;  %v1830_v60 = vld [vmem:[#allocation2] sm:$0xf]  ;;  %v2113_v61 = vld [vmem:[#allocation2 + $0x4] sm:$0xf0]  ;;  %v1902_v54 = vld [vmem:[#allocation7 + $0x24] sm:$0xf] }
 0x21d   : > { %v2129_v55 = vld [vmem:[#allocation7 + $0x30] sm:$0xf0] }
 0x21e   : > { %v697_v0 = vpack.c.bf16 %v691_v63, %v690_v62  ;;  %v2112_v62 = vld [vmem:[#allocation2 + $0x4] sm:$0xf]  ;;  %v1832_v63 = vld [vmem:[#allocation2 + $0x8] sm:$0xf0] }
 0x21f   : > { %v656_v1 = vpop.f32.mrf.mxu0  ;;  %v675_v2 = vpop.f32.mrf.mxu1  ;;  %v1862_v36 = vld [vmem:[#allocation2 + $0x40] sm:$0xf]  ;;  %v2120_v37 = vld [vmem:[#allocation2 + $0x44] sm:$0xf] }
 0x220   : > { %701 = vst [vmem:[#allocation2 + $0x48] sm:$0xff] %v697_v0  ;;  %v657_v3 = vadd.f32 %v656_v1, %v615_v44  ;;  %v676_v4 = vadd.f32 %v675_v2, %v615_v44  ;;  %v1855_v44 = vor.u32 %v2119_v40, %v1854_v42  ;;  %v1831_v0 = vor.u32 %v2113_v61, %v1830_v60  ;;  %v763_v2 = vpop.permute.xlu1 %762  ;;  %v2127_v42 = vld [vmem:[#allocation7 + $0x10] sm:$0xf0] }
 0x221   : > { %v1835_v1 = vor.u32 %v2112_v62, %v1832_v63  ;;  %v1903_v60 = vor.u32 %v2129_v55, %v1902_v54 }
 0x222   : > { %v684_v5 = vmul.f32 0.2, %v657_v3  ;;  %v685_v6 = vmul.f32 0.2, %v676_v4 }
 0x224   : > { %v692_v7 = vmax.f32 %v657_v3, %v684_v5  ;;  %v693_v8 = vmax.f32 %v676_v4, %v685_v6  ;;  %v761_v3 = vpop.permute.xlu2 %760  ;;  %v767_v6 = vpop.permute.xlu0 %766 }
 0x225   : > { %v769_v4 = vsel %vm529_vm1, %v761_v3, %v763_v2 }
 0x226   : > { %v698_v10 = vpack.c.bf16 %v693_v8, %v692_v7 }
 0x227   : > { %v658_v11 = vpop.f32.mrf.mxu0  ;;  %v677_v12 = vpop.f32.mrf.mxu1  ;;  %v2121_v33 = vld [vmem:[#allocation2 + $0x44] sm:$0xf0]  ;;  %v1864_v34 = vld [vmem:[#allocation2 + $0x48] sm:$0xf0] }
 0x228   : > { %702 = vst [vmem:[#allocation2 + $0x50] sm:$0xff] %v698_v10  ;;  %v659_v13 = vadd.f32 %v658_v11, %v620_v9  ;;  %v678_v14 = vadd.f32 %v677_v12, %v620_v9  ;;  %v1863_v38 = vor.u32 %v2121_v33, %v1862_v36  ;;  %v1867_v39 = vor.u32 %v2120_v37, %v1864_v34  ;;  %v1904_v36 = vld [vmem:[#allocation7 + $0x34] sm:$0xf0]  ;;  %v1894_v37 = vld [vmem:[#allocation7 + $0x4] sm:$0xf] }
 0x229   : > { %v2405_v10 = vmov 2  }
 0x22a   : > { %v686_v18 = vmul.f32 0.2, %v659_v13  ;;  %v687_v19 = vmul.f32 0.2, %v678_v14  ;;  %2257 = vset.pattern.permute.xlu1 %v2405_v10  ;;  %2259 = vset.pattern.permute.xlu0 %v2405_v10 }
 0x22b   : > { %916 = vperm.xlu1 %2257, %v2546_v16   ;;  %906 = vperm.xlu0 %2259, %v2551_v17  }
 0x22c   : > { %v694_v20 = vmax.f32 %v659_v13, %v686_v18  ;;  %v695_v25 = vmax.f32 %v678_v14, %v687_v19  ;;  %v765_v5 = vpop.permute.xlu2 %764  ;;  %2258 = vset.pattern.permute.xlu2 %v2405_v10  ;;  %v737_v13 = vpop.permute.xlu1 %736  ;;  %v2126_v19 = vld [vmem:[#allocation7 + $0x8] sm:$0xf] }
 0x22d   : > { %v770_v7 = vsel %vm529_vm1, %v765_v5, %v767_v6  ;;  %921 = vperm.xlu2 %2258, %v2560_v21  }
 0x22e   : > { %v699_v26 = vpack.c.bf16 %v695_v25, %v694_v20  ;;  %v1896_v20 = vld [vmem:[#allocation7 + $0x14] sm:$0xf0] }
 0x22f   : > { %v1870_v27 = vld [vmem:[#allocation2 + $0x50] sm:$0xf]  ;;  %v2122_v29 = vld [vmem:[#allocation2 + $0x54] sm:$0xf] }
 0x230   : > { %703 = vst [vmem:[#allocation2 + $0x58] sm:$0xff] %v699_v26  ;;  %v1899_v26 = vor.u32 %v2126_v19, %v1896_v20 }
 0x233   : > { %911 = vperm.xlu1 %2257, %v2565_v22   ;;  %v2128_v22 = vld [vmem:[#allocation7 + $0x28] sm:$0xf] }
 0x234   : > { %v742_v16 = vpop.permute.xlu2 %741  ;;  %v1907_v41 = vor.u32 %v2128_v22, %v1904_v36 }
 0x236   : > { %1072 = vrot.lane.b32.xlu0 %v1907_v41, %s2402_s15 }
 0x237   : > { %v2123_v28 = vld [vmem:[#allocation2 + $0x54] sm:$0xf0]  ;;  %v1872_v30 = vld [vmem:[#allocation2 + $0x58] sm:$0xf0] }
 0x238   : > { %v1871_v31 = vor.u32 %v2123_v28, %v1870_v27  ;;  %v1875_v32 = vor.u32 %v2122_v29, %v1872_v30  ;;  %v732_v27 = vpop.permute.xlu1 %731  ;;  %v727_v30 = vpop.permute.xlu0 %726  ;;  %v2141_v55 = vld [vmem:[#allocation2 + $0x54] sm:$0xf0] }
 0x23a   : > { %840 = vmatpush.bf16.msra.mxu2 %v1871_v31  ;;  %859 = vmatpush.bf16.msra.mxu3 %v1875_v32 }
 0x23b   : > { %1068 = vrot.lane.b32.xlu1 %v1899_v26, %s2402_s15 }
 0x23e   : > { %841 = vmatpush.bf16.msra.mxu2 %v1863_v38  ;;  %860 = vmatpush.bf16.msra.mxu3 %v1867_v39 }
 0x23f   : > { %1032 = vperm.xlu0 %2259, %v2574_v23  }
 0x242   : > { %842 = vmatpush.bf16.msra.mxu2 %v1855_v44  ;;  %861 = vmatpush.bf16.msra.mxu3 %v1859_v45  ;;  %v1895_v44 = vor.u32 %v2127_v42, %v1894_v37 }
 0x243   : > { %1042 = vperm.xlu1 %2257, %v2590_v15  }
 0x244   : > { %1066 = vrot.lane.b32.xlu2 %v1895_v44, %s2402_s15 }
 0x246   : > { %843 = vmatpush.bf16.msra.mxu2 %v1847_v56  ;;  %862 = vmatpush.bf16.msra.mxu3 %v1851_v57 }
 0x24a   : > { %844 = vmatpush.bf16.msra.mxu2 %v1839_v58  ;;  %863 = vmatpush.bf16.msra.mxu3 %v1843_v59 }
 0x24b   : > { %1037 = vperm.xlu1 %2257, %v2579_v24  }
 0x24c   : > { %1070 = vrot.lane.b32.xlu2 %v1903_v60, %s2402_s15 }
 0x24e   : > { %845 = vmatpush.bf16.msra.mxu2 %v1831_v0  ;;  %864 = vmatpush.bf16.msra.mxu3 %v1835_v1 }
 0x251   : > { %1876 = vmatmul.msk.bf16.vlgmr.msra.gmra.mxu2 %vm831_vm2, %v769_v4  ;;  %1878 = vmatmul.msk.bf16.vlgmr.msra.gmra.mxu3 %vm831_vm2, %v769_v4 }
 0x254   : > { %1047 = vperm.xlu2 %2258, %v2597_v35  }
 0x261   : > { %1877 = vmatmul.msk.bf16.gmra.mxu2 %vm831_vm2, %v770_v7  ;;  %1879 = vmatmul.msk.bf16.gmra.mxu3 %vm831_vm2, %v770_v7 }
 0x270   : > { %v935_v1 = vpop.permute.xlu2 %934 }
 0x288   : > { %v937_v15 = vpop.permute.xlu0 %936 }
 0x29d   : > { %v917_v2 = vpop.permute.xlu1 %916  ;;  %v907_v23 = vpop.permute.xlu0 %906 }
 0x2a5   : > { %v912_v10 = vpop.permute.xlu1 %911 }
 0x2d4   : > { %v847_v8 = vpop.f32.mrf.mxu2  ;;  %v866_v9 = vpop.f32.mrf.mxu3 }
 0x2d5   : > { %v848_v32 = vadd.f32 %v847_v8, %v727_v30  ;;  %v867_v21 = vadd.f32 %v866_v9, %v727_v30 }
 0x2d7   : > { %v876_v48 = vmul.f32 0.2, %v848_v32  ;;  %v877_v49 = vmul.f32 0.2, %v867_v21 }
 0x2d9   : > { %v884_v61 = vmax.f32 %v848_v32, %v876_v48  ;;  %v885_v62 = vmax.f32 %v867_v21, %v877_v49  ;;  %v922_v21 = vpop.permute.xlu2 %921 }
 0x2dc   : > { %v849_v11 = vpop.f32.mrf.mxu2  ;;  %v868_v12 = vpop.f32.mrf.mxu3 }
 0x2dd   : > { %v850_v29 = vadd.f32 %v849_v11, %v732_v27  ;;  %v869_v17 = vadd.f32 %v868_v12, %v732_v27 }
 0x2df   : > { %v878_v43 = vmul.f32 0.2, %v850_v29  ;;  %v879_v45 = vmul.f32 0.2, %v869_v17 }
 0x2e1   : > { %v886_v56 = vmax.f32 %v850_v29, %v878_v43  ;;  %v887_v57 = vmax.f32 %v869_v17, %v879_v45 }
 0x2e3   : > { %v892_v63 = vpack.c.bf16 %v886_v56, %v884_v61  ;;  %v893_v0 = vpack.c.bf16 %v887_v57, %v885_v62  ;;  %v1952_v56 = vld [vmem:[#allocation2 + $0x58] sm:$0xf0]  ;;  %v1950_v57 = vld [vmem:[#allocation2 + $0x50] sm:$0xf]  ;;  %v2139_v61 = vld [vmem:[#allocation2 + $0x44] sm:$0xf0] }
 0x2e4   : > { %v852_v14 = vpop.f32.mrf.mxu2  ;;  %v871_v18 = vpop.f32.mrf.mxu3  ;;  %v1944_v62 = vld [vmem:[#allocation2 + $0x48] sm:$0xf0] }
 0x2e5   : > { %v853_v25 = vadd.f32 %v852_v14, %v737_v13  ;;  %v872_v28 = vadd.f32 %v871_v18, %v737_v13 }
 0x2e7   : > { %v880_v31 = vmul.f32 0.2, %v853_v25  ;;  %v881_v38 = vmul.f32 0.2, %v872_v28 }
 0x2e9   : > { %v888_v50 = vmax.f32 %v853_v25, %v880_v31  ;;  %v889_v51 = vmax.f32 %v872_v28, %v881_v38 }
 0x2ec   : > { %v854_v33 = vpop.f32.mrf.mxu2  ;;  %v873_v34 = vpop.f32.mrf.mxu3 }
 0x2ed   : > { %v855_v39 = vadd.f32 %v854_v33, %v742_v16  ;;  %v874_v40 = vadd.f32 %v873_v34, %v742_v16 }
 0x2ef   : > { %v882_v46 = vmul.f32 0.2, %v855_v39  ;;  %v883_v47 = vmul.f32 0.2, %v874_v40 }
 0x2f1   : > { %v890_v52 = vmax.f32 %v855_v39, %v882_v46  ;;  %v891_v53 = vmax.f32 %v874_v40, %v883_v47 }
 0x2f3   : > { %v894_v58 = vpack.c.bf16 %v890_v52, %v888_v50  ;;  %v895_v59 = vpack.c.bf16 %v891_v53, %v889_v51 }
 0x2f5   : > { %950 = vmatpush.bf16.msra.mxu0 %v894_v58  ;;  %969 = vmatpush.bf16.msra.mxu1 %v895_v59  ;;  %v2140_v58 = vld [vmem:[#allocation2 + $0x54] sm:$0xf]  ;;  %v1951_v59 = vor.u32 %v2141_v55, %v1950_v57  ;;  %v2161_v55 = vld [vmem:[#allocation2 + $0x44] sm:$0xf0]  ;;  %v1994_v57 = vld [vmem:[#allocation7 + $0x28] sm:$0xf] }
 0x2f6   : > { %v1955_v60 = vor.u32 %v2140_v58, %v1952_v56  ;;  %v2034_v56 = vld [vmem:[#allocation2 + $0x40] sm:$0xf]  ;;  %v2151_v58 = vld [vmem:[#allocation7 + $0x34] sm:$0xf0] }
 0x2f9   : > { %951 = vmatpush.bf16.msra.mxu0 %v892_v63  ;;  %970 = vmatpush.bf16.msra.mxu1 %v893_v0  ;;  %v1942_v63 = vld [vmem:[#allocation2 + $0x40] sm:$0xf]  ;;  %v2138_v0 = vld [vmem:[#allocation2 + $0x44] sm:$0xf] }
 0x2fc   : > { %1888 = vmatmul.msk.bf16.vlgmr.msra.gmra.mxu0 %vm374_vm0, %v935_v1  ;;  %1890 = vmatmul.msk.bf16.vlgmr.msra.gmra.mxu1 %vm374_vm0, %v935_v1  ;;  %v1943_v1 = vor.u32 %v2139_v61, %v1942_v63  ;;  %v1995_v61 = vor.u32 %v2151_v58, %v1994_v57 }
 0x30c   : > { %1889 = vmatmul.msk.bf16.gmra.mxu0 %vm374_vm0, %v937_v15  ;;  %1891 = vmatmul.msk.bf16.gmra.mxu1 %vm374_vm0, %v937_v15  ;;  %v1947_v15 = vor.u32 %v2138_v0, %v1944_v62  ;;  %v2026_v62 = vld [vmem:[#allocation2 + $0x30] sm:$0xf]  ;;  %v1073_v0 = vpop.permute.xlu0 %1072 }
 0x379   : > { %v953_v3 = vpop.f32.mrf.mxu0  ;;  %v972_v4 = vpop.f32.mrf.mxu1 }
 0x37a   : > { %v954_v5 = vadd.f32 %v953_v3, %v907_v23  ;;  %v973_v6 = vadd.f32 %v972_v4, %v907_v23  ;;  %v1936_v23 = vld [vmem:[#allocation2 + $0x38] sm:$0xf0]  ;;  %v1934_v3 = vld [vmem:[#allocation2 + $0x30] sm:$0xf]  ;;  %v2136_v4 = vld [vmem:[#allocation2 + $0x34] sm:$0xf] }
 0x37c   : > { %v982_v7 = vmul.f32 0.2, %v954_v5  ;;  %v983_v8 = vmul.f32 0.2, %v973_v6 }
 0x37e   : > { %v990_v24 = vmax.f32 %v954_v5, %v982_v7  ;;  %v991_v9 = vmax.f32 %v973_v6, %v983_v8  ;;  %v1939_v6 = vor.u32 %v2136_v4, %v1936_v23  ;;  %v1926_v7 = vld [vmem:[#allocation2 + $0x20] sm:$0xf]  ;;  %v2134_v8 = vld [vmem:[#allocation2 + $0x24] sm:$0xf]  ;;  %v2157_v23 = vld [vmem:[#allocation2 + $0x24] sm:$0xf0] }
 0x380   : > { %v998_v11 = vpack.c.bf16 %v991_v9, %v990_v24  ;;  %v2135_v24 = vld [vmem:[#allocation2 + $0x24] sm:$0xf0]  ;;  %v1928_v9 = vld [vmem:[#allocation2 + $0x28] sm:$0xf0] }
 0x381   : > { %v955_v12 = vpop.f32.mrf.mxu0  ;;  %v974_v13 = vpop.f32.mrf.mxu1 }
 0x382   : > { %1002 = vst [vmem:[#allocation2 + $0x60] sm:$0xff] %v998_v11  ;;  %v956_v35 = vadd.f32 %v955_v12, %v912_v10  ;;  %v975_v14 = vadd.f32 %v974_v13, %v912_v10  ;;  %v1918_v10 = vld [vmem:[#allocation2 + $0x10] sm:$0xf]  ;;  %v2133_v11 = vld [vmem:[#allocation2 + $0x14] sm:$0xf0] }
 0x383   : > { %v2132_v12 = vld [vmem:[#allocation2 + $0x14] sm:$0xf]  ;;  %v1920_v13 = vld [vmem:[#allocation2 + $0x18] sm:$0xf0] }
 0x384   : > { %v984_v18 = vmul.f32 0.2, %v956_v35  ;;  %v985_v19 = vmul.f32 0.2, %v975_v14 }
 0x386   : > { %v992_v20 = vmax.f32 %v956_v35, %v984_v18  ;;  %v993_v25 = vmax.f32 %v975_v14, %v985_v19  ;;  %v1223_v35 = vld [vmem:[%s2774_s2 + $0x10] sm:$0xff]  ;;  %v2147_v14 = vld [vmem:[#allocation4 + $0x8] sm:$0xff]  ;;  %v1927_v18 = vor.u32 %v2135_v24, %v1926_v7  ;;  %v1931_v19 = vor.u32 %v2134_v8, %v1928_v9  ;;  %v1033_v9 = vpop.permute.xlu0 %1032 }
 0x387   : > { %1257 = vrot.lane.b32.xlu0 %v2147_v14, %s2407_s26  ;;  %v2153_v14 = vld [vmem:[#allocation2 + $0x4] sm:$0xf0] }
 0x388   : > { %v999_v26 = vpack.c.bf16 %v993_v25, %v992_v20  ;;  %v2406_v20 = vmov 3   ;;  %v2146_v25 = vld [vmem:[#allocation4] sm:$0xff] }
 0x389   : > { %v958_v27 = vpop.f32.mrf.mxu0  ;;  %v977_v28 = vpop.f32.mrf.mxu1  ;;  %v1958_v51 = vld [vmem:[#allocation2 + $0x60] sm:$0xf]  ;;  %v2142_v52 = vld [vmem:[#allocation2 + $0x64] sm:$0xf]  ;;  %2260 = vset.pattern.permute.xlu1 %v2406_v20  ;;  %2262 = vset.pattern.permute.xlu0 %v2406_v20 }
 0x38a   : > { %1003 = vst [vmem:[#allocation2 + $0x68] sm:$0xff] %v999_v26  ;;  %v959_v29 = vadd.f32 %v958_v27, %v917_v2  ;;  %v978_v16 = vadd.f32 %v977_v28, %v917_v2  ;;  %v2137_v2 = vld [vmem:[#allocation2 + $0x34] sm:$0xf0]  ;;  %1237 = vperm.xlu1 %2260, %v1223_v35   ;;  %v1919_v26 = vor.u32 %v2133_v11, %v1918_v10  ;;  %v1910_v28 = vld [vmem:[#allocation2] sm:$0xf] }
 0x38b   : > { %v1935_v5 = vor.u32 %v2137_v2, %v1934_v3  ;;  %v1923_v27 = vor.u32 %v2132_v12, %v1920_v13  ;;  %1255 = vrot.lane.b32.xlu2 %v2146_v25, %s2407_s26  ;;  %v2018_v2 = vld [vmem:[#allocation2 + $0x20] sm:$0xf]  ;;  %v2010_v11 = vld [vmem:[#allocation2 + $0x10] sm:$0xf]  ;;  %v2155_v12 = vld [vmem:[#allocation2 + $0x14] sm:$0xf0] }
 0x38c   : > { %v986_v30 = vmul.f32 0.2, %v959_v29  ;;  %v987_v17 = vmul.f32 0.2, %v978_v16  ;;  %2261 = vset.pattern.permute.xlu2 %v2406_v20  ;;  %v2019_v3 = vor.u32 %v2157_v23, %v2018_v2  ;;  %v2011_v13 = vor.u32 %v2155_v12, %v2010_v11  ;;  %v2002_v35 = vld [vmem:[#allocation2] sm:$0xf] }
 0x38d   : > { %v2036_v12 = vld [vmem:[#allocation2 + $0x48] sm:$0xf0]  ;;  %s1727_s26 = sshll.u32 %s2522_s28, 6 }
 0x38e   : > { %v994_v31 = vmax.f32 %v959_v29, %v986_v30  ;;  %v995_v32 = vmax.f32 %v978_v16, %v987_v17  ;;  %v2131_v29 = vld [vmem:[#allocation2 + $0x4] sm:$0xf0]  ;;  %v2130_v16 = vld [vmem:[#allocation2 + $0x4] sm:$0xf]  ;;  %v1912_v30 = vld [vmem:[#allocation2 + $0x8] sm:$0xf0] }
 0x38f   : > { %v1911_v17 = vor.u32 %v2131_v29, %v1910_v28  ;;  %s2728_s7 = scalar_lea.vmem [#allocation9], %s1727_s26 }
 0x390   : > { %v1000_v33 = vpack.c.bf16 %v995_v32, %v994_v31  ;;  %v1915_v31 = vor.u32 %v2130_v16, %v1912_v30  ;;  %s1622_s12 = sshll.u32 %s2728_s7, 4  ;;  %s1623_s12 = int_to_ptr.vmem [resolvable:$true] %s1622_s12 }
 0x391   : > { %v960_v34 = vpop.f32.mrf.mxu0  ;;  %v979_v22 = vpop.f32.mrf.mxu1  ;;  %v2143_v49 = vld [vmem:[#allocation2 + $0x64] sm:$0xf0]  ;;  %v1960_v50 = vld [vmem:[#allocation2 + $0x68] sm:$0xf0] }
 0x392   : > { %1004 = vst [vmem:[#allocation2 + $0x70] sm:$0xff] %v1000_v33  ;;  %v961_v36 = vadd.f32 %v960_v34, %v922_v21  ;;  %v980_v37 = vadd.f32 %v979_v22, %v922_v21  ;;  %v1959_v53 = vor.u32 %v2143_v49, %v1958_v51  ;;  %v1963_v54 = vor.u32 %v2142_v52, %v1960_v50  ;;  %v1222_v21 = vld [vmem:[%s2774_s2 + $0x8] sm:$0xff]  ;;  %v1221_v33 = vld [vmem:[%s2774_s2] sm:$0xff]  ;;  %v1224_v22 = vld [vmem:[%s2774_s2 + $0x18] sm:$0xff] }
 0x393   : > { %1232 = vperm.xlu1 %2260, %v1222_v21   ;;  %1227 = vperm.xlu0 %2262, %v1221_v33   ;;  %v2163_v51 = vld [vmem:[#allocation2 + $0x54] sm:$0xf0]  ;;  %v2052_v23 = vld [vmem:[#allocation2 + $0x68] sm:$0xf0] }
 0x394   : > { %v988_v38 = vmul.f32 0.2, %v961_v36  ;;  %v989_v39 = vmul.f32 0.2, %v980_v37  ;;  %1242 = vperm.xlu2 %2261, %v1224_v22  }
 0x396   : > { %v996_v40 = vmax.f32 %v961_v36, %v988_v38  ;;  %v997_v41 = vmax.f32 %v980_v37, %v989_v39  ;;  %v1069_v36 = vpop.permute.xlu1 %1068  ;;  %v1067_v37 = vpop.permute.xlu2 %1066  ;;  %v2165_v39 = vld [vmem:[#allocation2 + $0x64] sm:$0xf0] }
 0x398   : > { %v1001_v42 = vpack.c.bf16 %v997_v41, %v996_v40  ;;  %v2148_v40 = vld [vmem:[#allocation7 + $0xc] sm:$0xf]  ;;  %v1075_v41 = vsel %vm831_vm2, %v1067_v37, %v1069_v36 }
 0x399   : > { %v1966_v43 = vld [vmem:[#allocation2 + $0x70] sm:$0xf]  ;;  %v2144_v45 = vld [vmem:[#allocation2 + $0x74] sm:$0xf] }
 0x39a   : > { %1005 = vst [vmem:[#allocation2 + $0x78] sm:$0xff] %v1001_v42  ;;  %v2058_v34 = vld [vmem:[#allocation2 + $0x70] sm:$0xf]  ;;  %v1988_v42 = vld [vmem:[#allocation7 + $0x18] sm:$0xf0] }
 0x39b   : > { %v1991_v49 = vor.u32 %v2148_v40, %v1988_v42 }
 0x39d   : > { %1393 = vrot.lane.b32.xlu1 %v1991_v49, %s2402_s15 }
 0x39e   : > { %v1071_v63 = vpop.permute.xlu2 %1070  ;;  %v1043_v4 = vpop.permute.xlu1 %1042 }
 0x3a1   : > { %v2145_v44 = vld [vmem:[#allocation2 + $0x74] sm:$0xf0]  ;;  %v1968_v46 = vld [vmem:[#allocation2 + $0x78] sm:$0xf0] }
 0x3a2   : > { %v1967_v47 = vor.u32 %v2145_v44, %v1966_v43  ;;  %v1971_v48 = vor.u32 %v2144_v45, %v1968_v46  ;;  %v2167_v32 = vld [vmem:[#allocation2 + $0x74] sm:$0xf0]  ;;  %v2150_v43 = vld [vmem:[#allocation7 + $0x2c] sm:$0xf]  ;;  %v1996_v44 = vld [vmem:[#allocation7 + $0x38] sm:$0xf0] }
 0x3a3   : > { %v2059_v38 = vor.u32 %v2167_v32, %v2058_v34  ;;  %v2050_v45 = vld [vmem:[#allocation2 + $0x60] sm:$0xf]  ;;  %v1986_v46 = vld [vmem:[#allocation7 + $0x8] sm:$0xf]  ;;  %v1999_v50 = vor.u32 %v2150_v43, %v1996_v44 }
 0x3a4   : > { %1159 = vmatpush.bf16.msrb.mxu2 %v1967_v47  ;;  %1178 = vmatpush.bf16.msrb.mxu3 %v1971_v48  ;;  %v2149_v47 = vld [vmem:[#allocation7 + $0x14] sm:$0xf0]  ;;  %v2051_v48 = vor.u32 %v2165_v39, %v2050_v45 }
 0x3a5   : > { %v1987_v52 = vor.u32 %v2149_v47, %v1986_v46  ;;  %1397 = vrot.lane.b32.xlu0 %v1999_v50, %s2402_s15 }
 0x3a7   : > { %1391 = vrot.lane.b32.xlu2 %v1987_v52, %s2402_s15 }
 0x3a8   : > { %1160 = vmatpush.bf16.msrb.mxu2 %v1959_v53  ;;  %1179 = vmatpush.bf16.msrb.mxu3 %v1963_v54  ;;  %v2042_v53 = vld [vmem:[#allocation2 + $0x50] sm:$0xf] }
 0x3a9   : > { %v2043_v54 = vor.u32 %v2163_v51, %v2042_v53 }
 0x3ac   : > { %1161 = vmatpush.bf16.msrb.mxu2 %v1951_v59  ;;  %1180 = vmatpush.bf16.msrb.mxu3 %v1955_v60  ;;  %v2035_v59 = vor.u32 %v2161_v55, %v2034_v56  ;;  %v2159_v60 = vld [vmem:[#allocation2 + $0x34] sm:$0xf0]  ;;  %v1351_v56 = vld [vmem:[%s2776_s4] sm:$0xff] }
 0x3ad   : > { %1357 = vperm.xlu1 %2260, %v1351_v56  }
 0x3af   : > { %1395 = vrot.lane.b32.xlu2 %v1995_v61, %s2402_s15  ;;  %s2339_s15 = scalar_lea.hbm %s2338_s14, 64 }
 0x3b0   : > { %1162 = vmatpush.bf16.msrb.mxu2 %v1943_v1  ;;  %1181 = vmatpush.bf16.msrb.mxu3 %v1947_v15  ;;  %v2027_v1 = vor.u32 %v2159_v60, %v2026_v62  ;;  %v1076_v15 = vsel %vm831_vm2, %v1071_v63, %v1073_v0  ;;  %v2060_v63 = vld [vmem:[#allocation2 + $0x78] sm:$0xf0]  ;;  %p2340_p2 = scmp.ne.s32.totalorder %s2338_s14, %s2339_s15  ;;  %p2345_p7 = scmp.lt.s32.totalorder %s2343_s17, %s2339_s15 }
 0x3b2   : > { %p2341_p3 = pnand %p2340_p2, %p2484_p6  ;;  %p2346_p8 = por %p2345_p7, %p2344_p5 }
 0x3b4   : > { %1163 = vmatpush.bf16.msrb.mxu2 %v1935_v5  ;;  %1182 = vmatpush.bf16.msrb.mxu3 %v1939_v6  ;;  %v1038_v5 = vpop.permute.xlu1 %1037  ;;  %v1048_v6 = vpop.permute.xlu2 %1047  ;;  %p2342_p4 = pneg %p2341_p3 }
 0x3b6   : > { %p2347_p9 = pnand %p2346_p8, %p2342_p4 }
 0x3b8   : > { %1164 = vmatpush.bf16.msrb.mxu2 %v1927_v18  ;;  %1183 = vmatpush.bf16.msrb.mxu3 %v1931_v19  ;;  %v2003_v18 = vor.u32 %v2153_v14, %v2002_v35  ;;  %v2028_v14 = vld [vmem:[#allocation2 + $0x38] sm:$0xf0] }
 0x3bc   : > { %1165 = vmatpush.bf16.msrb.mxu2 %v1919_v26  ;;  %1184 = vmatpush.bf16.msrb.mxu3 %v1923_v27 }
 0x3c0   : > { %1166 = vmatpush.bf16.msrb.mxu2 %v1911_v17  ;;  %1185 = vmatpush.bf16.msrb.mxu3 %v1915_v31 }
 0x3c3   : > { %1167 = vmatmul.bf16.vlgmr.msrb.gmra.mxu2 %v1075_v41  ;;  %1186 = vmatmul.bf16.vlgmr.msrb.gmra.mxu3 %v1075_v41 }
 0x3c4   : > { %1509 = vmatpush.bf16.msra.mxu2 %v2059_v38 }
 0x3c8   : > { %1510 = vmatpush.bf16.msra.mxu2 %v2051_v48 }
 0x3cc   : > { %1511 = vmatpush.bf16.msra.mxu2 %v2043_v54 }
 0x3d0   : > { %1512 = vmatpush.bf16.msra.mxu2 %v2035_v59 }
 0x3d3   : > { %1172 = vmatmul.bf16.gmra.mxu2 %v1076_v15  ;;  %1191 = vmatmul.bf16.gmra.mxu3 %v1076_v15  ;;  %v2166_v15 = vld [vmem:[#allocation2 + $0x74] sm:$0xf] }
 0x3d4   : > { %1513 = vmatpush.bf16.msra.mxu2 %v2027_v1  ;;  %v2063_v2 = vor.u32 %v2166_v15, %v2060_v63 }
 0x3d8   : > { %1514 = vmatpush.bf16.msra.mxu2 %v2019_v3  ;;  %v2164_v3 = vld [vmem:[#allocation2 + $0x64] sm:$0xf] }
 0x3dc   : > { %1515 = vmatpush.bf16.msra.mxu2 %v2011_v13  ;;  %v2160_v13 = vld [vmem:[#allocation2 + $0x44] sm:$0xf] }
 0x3dd   : > { %v2039_v35 = vor.u32 %v2160_v13, %v2036_v12 }
 0x3e0   : > { %1516 = vmatpush.bf16.msra.mxu2 %v2003_v18  ;;  %v2158_v18 = vld [vmem:[#allocation2 + $0x34] sm:$0xf] }
 0x3e5   : > { %v2663_v7 = vpop.permute.xlu2 %1255 }
 0x3ee   : > { %v2667_v24 = vpop.permute.xlu2 %1242 }
 0x3f9   : > { %v2671_v20 = vpop.permute.xlu0 %1257 }
 0x3fc   : > { %v2665_v8 = vpop.permute.xlu1 %1237 }
 0x401   : > { %v1392_v19 = vpop.permute.xlu2 %1391 }
 0x405   : > { %v2669_v10 = vpop.permute.xlu1 %1232  ;;  %v2680_v29 = vpop.permute.xlu0 %1227 }
 0x409   : > { %v1396_v17 = vpop.permute.xlu2 %1395 }
 0x40f   : > { %v2673_v27 = vpop.permute.xlu1 %1393 }
 0x410   : > { %v2677_v28 = vsel %vm831_vm2, %v1392_v19, %v2673_v27  ;;  %v2031_v19 = vor.u32 %v2158_v18, %v2028_v14 }
 0x411   : > { %1517 = vmatmul.bf16.vlgmr.msra.gmra.mxu2 %v2677_v28 }
 0x417   : > { %v2682_v31 = vpop.permute.xlu0 %1397 }
 0x418   : > { %v2686_v33 = vsel %vm831_vm2, %v1396_v17, %v2682_v31 }
 0x421   : > { %1522 = vmatmul.bf16.gmra.mxu2 %v2686_v33 }
 0x446   : > { %v1168_v25 = vpop.f32.mrf.mxu2  ;;  %v1187_v26 = vpop.f32.mrf.mxu3 }
 0x447   : > { %v1169_v38 = vadd.f32 %v1168_v25, %v1033_v9  ;;  %v1188_v39 = vadd.f32 %v1187_v26, %v1033_v9  ;;  %v2162_v9 = vld [vmem:[#allocation2 + $0x54] sm:$0xf]  ;;  %v2156_v25 = vld [vmem:[#allocation2 + $0x24] sm:$0xf]  ;;  %v2020_v26 = vld [vmem:[#allocation2 + $0x28] sm:$0xf0] }
 0x448   : > { %v2023_v17 = vor.u32 %v2156_v25, %v2020_v26 }
 0x449   : > { %v1197_v50 = vmul.f32 0.2, %v1169_v38  ;;  %v1198_v51 = vmul.f32 0.2, %v1188_v39 }
 0x44b   : > { %v1205_v61 = vmax.f32 %v1169_v38, %v1197_v50  ;;  %v1206_v62 = vmax.f32 %v1188_v39, %v1198_v51 }
 0x44e   : > { %v1170_v16 = vpop.f32.mrf.mxu2  ;;  %v1189_v30 = vpop.f32.mrf.mxu3 }
 0x44f   : > { %v1171_v36 = vadd.f32 %v1170_v16, %v1038_v5  ;;  %v1190_v37 = vadd.f32 %v1189_v30, %v1038_v5  ;;  %v1354_v5 = vld [vmem:[%s2776_s4 + $0x18] sm:$0xff]  ;;  %v2154_v16 = vld [vmem:[#allocation2 + $0x14] sm:$0xf] }
 0x450   : > { %1372 = vperm.xlu1 %2260, %v1354_v5   ;;  %v2012_v30 = vld [vmem:[#allocation2 + $0x18] sm:$0xf0] }
 0x451   : > { %v1199_v46 = vmul.f32 0.2, %v1171_v36  ;;  %v1200_v47 = vmul.f32 0.2, %v1190_v37 }
 0x453   : > { %v1207_v57 = vmax.f32 %v1171_v36, %v1199_v46  ;;  %v1208_v58 = vmax.f32 %v1190_v37, %v1200_v47 }
 0x455   : > { %v1213_v0 = vpack.c.bf16 %v1207_v57, %v1205_v61  ;;  %v1214_v1 = vpack.c.bf16 %v1208_v58, %v1206_v62 }
 0x456   : > { %v1173_v32 = vpop.f32.mrf.mxu2  ;;  %v1192_v21 = vpop.f32.mrf.mxu3 }
 0x457   : > { %v1174_v34 = vadd.f32 %v1173_v32, %v1043_v4  ;;  %v1193_v22 = vadd.f32 %v1192_v21, %v1043_v4  ;;  %v2055_v4 = vor.u32 %v2164_v3, %v2052_v23  ;;  %v1352_v32 = vld [vmem:[%s2776_s4 + $0x8] sm:$0xff]  ;;  %v2015_v21 = vor.u32 %v2154_v16, %v2012_v30 }
 0x458   : > { %1362 = vperm.xlu2 %2261, %v1352_v32  }
 0x459   : > { %v1201_v42 = vmul.f32 0.2, %v1174_v34  ;;  %v1202_v43 = vmul.f32 0.2, %v1193_v22 }
 0x45b   : > { %v1209_v52 = vmax.f32 %v1174_v34, %v1201_v42  ;;  %v1210_v53 = vmax.f32 %v1193_v22, %v1202_v43  ;;  %v2152_v34 = vld [vmem:[#allocation2 + $0x4] sm:$0xf]  ;;  %v2004_v22 = vld [vmem:[#allocation2 + $0x8] sm:$0xf0] }
 0x45c   : > { %v2007_v36 = vor.u32 %v2152_v34, %v2004_v22 }
 0x45e   : > { %v1175_v40 = vpop.f32.mrf.mxu2  ;;  %v1194_v41 = vpop.f32.mrf.mxu3 }
 0x45f   : > { %v1176_v44 = vadd.f32 %v1175_v40, %v1048_v6  ;;  %v1195_v45 = vadd.f32 %v1194_v41, %v1048_v6  ;;  %v2044_v6 = vld [vmem:[#allocation2 + $0x58] sm:$0xf0] }
 0x460   : > { %v2047_v11 = vor.u32 %v2162_v9, %v2044_v6 }
 0x461   : > { %v1203_v48 = vmul.f32 0.2, %v1176_v44  ;;  %v1204_v49 = vmul.f32 0.2, %v1195_v45 }
 0x463   : > { %v1211_v54 = vmax.f32 %v1176_v44, %v1203_v48  ;;  %v1212_v55 = vmax.f32 %v1195_v45, %v1204_v49 }
 0x465   : > { %v1215_v59 = vpack.c.bf16 %v1211_v54, %v1209_v52  ;;  %v1216_v60 = vpack.c.bf16 %v1212_v55, %v1210_v53 }
 0x467   : > { %1271 = vmatpush.bf16.msrb.mxu0 %v1215_v59  ;;  %1290 = vmatpush.bf16.msrb.mxu1 %v1216_v60 }
 0x46b   : > { %1272 = vmatpush.bf16.msrb.mxu0 %v1213_v0  ;;  %1291 = vmatpush.bf16.msrb.mxu1 %v1214_v1 }
 0x46e   : > { %1980 = vmatmul.msk.bf16.vlgmr.msrb.gmra.mxu0 %vm374_vm0, %v2663_v7  ;;  %1982 = vmatmul.msk.bf16.vlgmr.msrb.gmra.mxu1 %vm374_vm0, %v2663_v7  ;;  %v1353_v7 = vld [vmem:[%s2776_s4 + $0x10] sm:$0xff] }
 0x46f   : > { %1547 = vmatpush.bf16.msra.mxu0 %v2063_v2  ;;  %1367 = vperm.xlu0 %2262, %v1353_v7   ;;  %v1358_v7 = vpop.permute.xlu1 %1357 }
 0x473   : > { %1548 = vmatpush.bf16.msra.mxu0 %v2055_v4 }
 0x477   : > { %1549 = vmatpush.bf16.msra.mxu0 %v2047_v11 }
 0x47b   : > { %1550 = vmatpush.bf16.msra.mxu0 %v2039_v35 }
 0x47e   : > { %1981 = vmatmul.msk.bf16.gmra.mxu0 %vm374_vm0, %v2671_v20  ;;  %1983 = vmatmul.msk.bf16.gmra.mxu1 %vm374_vm0, %v2671_v20 }
 0x47f   : > { %1551 = vmatpush.bf16.msra.mxu0 %v2031_v19 }
 0x483   : > { %1552 = vmatpush.bf16.msra.mxu0 %v2023_v17 }
 0x487   : > { %1553 = vmatpush.bf16.msra.mxu0 %v2015_v21 }
 0x48b   : > { %1554 = vmatpush.bf16.msra.mxu0 %v2007_v36 }
 0x48e   : > { %1555 = vmatmul.bf16.vlgmr.msra.gmra.mxu0 %v2677_v28 }
 0x494   : > { %v1518_v18 = vpop.f32.mrf.mxu2 }
 0x495   : > { %v1519_v32 = vadd.f32 %v1518_v18, %v1358_v7 }
 0x49c   : > { %v1520_v17 = vpop.f32.mrf.mxu2 }
 0x49e   : > { %1560 = vmatmul.bf16.gmra.mxu0 %v2686_v33 }
 0x4b2   : > { %v1363_v34 = vpop.permute.xlu2 %1362 }
 0x4eb   : > { %v1274_v37 = vpop.f32.mrf.mxu0  ;;  %v1293_v38 = vpop.f32.mrf.mxu1 }
 0x4ec   : > { %v1275_v20 = vadd.f32 %v1274_v37, %v2680_v29  ;;  %v1294_v39 = vadd.f32 %v1293_v38, %v2680_v29 }
 0x4ee   : > { %v1303_v40 = vmul.f32 0.2, %v1275_v20  ;;  %v1304_v41 = vmul.f32 0.2, %v1294_v39 }
 0x4f0   : > { %v1311_v42 = vmax.f32 %v1275_v20, %v1303_v40  ;;  %v1312_v43 = vmax.f32 %v1294_v39, %v1304_v41  ;;  %v1521_v41 = vadd.f32 %v1520_v17, %v1363_v34 }
 0x4f2   : > { %v1319_v44 = vpack.c.bf16 %v1312_v43, %v1311_v42  ;;  %v1368_v43 = vpop.permute.xlu0 %1367 }
 0x4f3   : > { %v1276_v45 = vpop.f32.mrf.mxu0  ;;  %v1295_v46 = vpop.f32.mrf.mxu1 }
 0x4f4   : > { %1323 = vst [vmem:[#allocation2 + $0x80] sm:$0xff] %v1319_v44  ;;  %v1277_v47 = vadd.f32 %v1276_v45, %v2669_v10  ;;  %v1296_v28 = vadd.f32 %v1295_v46, %v2669_v10 }
 0x4f6   : > { %v1305_v48 = vmul.f32 0.2, %v1277_v47  ;;  %v1306_v33 = vmul.f32 0.2, %v1296_v28 }
 0x4f8   : > { %v1313_v49 = vmax.f32 %v1277_v47, %v1305_v48  ;;  %v1314_v50 = vmax.f32 %v1296_v28, %v1306_v33  ;;  %v1523_v47 = vpop.f32.mrf.mxu2 }
 0x4fa   : > { %v1320_v51 = vpack.c.bf16 %v1314_v50, %v1313_v49 }
 0x4fb   : > { %v1279_v52 = vpop.f32.mrf.mxu0  ;;  %v1298_v53 = vpop.f32.mrf.mxu1  ;;  %v2066_v12 = vld [vmem:[#allocation2 + $0x80] sm:$0xf]  ;;  %v2168_v13 = vld [vmem:[#allocation2 + $0x84] sm:$0xf] }
 0x4fc   : > { %1324 = vst [vmem:[#allocation2 + $0x88] sm:$0xff] %v1320_v51  ;;  %v1280_v29 = vadd.f32 %v1279_v52, %v2665_v8  ;;  %v1299_v54 = vadd.f32 %v1298_v53, %v2665_v8  ;;  %v1524_v52 = vadd.f32 %v1523_v47, %v1368_v43 }
 0x4fe   : > { %v1307_v55 = vmul.f32 0.2, %v1280_v29  ;;  %v1308_v56 = vmul.f32 0.2, %v1299_v54 }
 0x500   : > { %v1315_v57 = vmax.f32 %v1280_v29, %v1307_v55  ;;  %v1316_v58 = vmax.f32 %v1299_v54, %v1308_v56  ;;  %v1373_v29 = vpop.permute.xlu1 %1372 }
 0x502   : > { %v1321_v59 = vpack.c.bf16 %v1316_v58, %v1315_v57 }
 0x503   : > { %v1281_v60 = vpop.f32.mrf.mxu0  ;;  %v1300_v61 = vpop.f32.mrf.mxu1  ;;  %v2169_v9 = vld [vmem:[#allocation2 + $0x84] sm:$0xf0]  ;;  %v2068_v11 = vld [vmem:[#allocation2 + $0x88] sm:$0xf0] }
 0x504   : > { %1325 = vst [vmem:[#allocation2 + $0x90] sm:$0xff] %v1321_v59  ;;  %v1282_v10 = vadd.f32 %v1281_v60, %v2667_v24  ;;  %v1301_v62 = vadd.f32 %v1300_v61, %v2667_v24  ;;  %v2067_v24 = vor.u32 %v2169_v9, %v2066_v12  ;;  %v2071_v35 = vor.u32 %v2168_v13, %v2068_v11  ;;  %v1525_v60 = vpop.f32.mrf.mxu2 }
 0x506   : > { %v1309_v63 = vmul.f32 0.2, %v1282_v10  ;;  %v1310_v0 = vmul.f32 0.2, %v1301_v62 }
 0x508   : > { %v1317_v1 = vmax.f32 %v1282_v10, %v1309_v63  ;;  %v1318_v15 = vmax.f32 %v1301_v62, %v1310_v0  ;;  %v1526_v62 = vadd.f32 %v1525_v60, %v1373_v29 }
 0x50a   : > { %v1322_v2 = vpack.c.bf16 %v1318_v15, %v1317_v1 }
 0x50b   : > { %v2074_v23 = vld [vmem:[#allocation2 + $0x90] sm:$0xf]  ;;  %v2170_v3 = vld [vmem:[#allocation2 + $0x94] sm:$0xf]  ;;  %v1556_v14 = vpop.f32.mrf.mxu0 }
 0x50c   : > { %1326 = vst [vmem:[#allocation2 + $0x98] sm:$0xff] %v1322_v2  ;;  %v1557_v19 = vadd.f32 %v1556_v14, %v1358_v7 }
 0x513   : > { %v2171_v8 = vld [vmem:[#allocation2 + $0x94] sm:$0xf0]  ;;  %v2076_v4 = vld [vmem:[#allocation2 + $0x98] sm:$0xf0]  ;;  %v1558_v25 = vpop.f32.mrf.mxu0 }
 0x514   : > { %v2075_v5 = vor.u32 %v2171_v8, %v2074_v23  ;;  %v2079_v6 = vor.u32 %v2170_v3, %v2076_v4  ;;  %v1559_v22 = vadd.f32 %v1558_v25, %v1363_v34 }
 0x516   : > { %1534 = vmatpush.bf16.msra.mxu3 %v2075_v5  ;;  %1572 = vmatpush.bf16.msra.mxu1 %v2079_v6 }
 0x51a   : > { %1535 = vmatpush.bf16.msra.mxu3 %v2067_v24  ;;  %1573 = vmatpush.bf16.msra.mxu1 %v2071_v35 }
 0x51b   : > { %v1561_v20 = vpop.f32.mrf.mxu0 }
 0x51c   : > { %v1562_v45 = vadd.f32 %v1561_v20, %v1368_v43 }
 0x51d   : > { %2080 = vmatmul.msk.bf16.vlgmr.msra.gmra.mxu3 %vm374_vm0, %v2673_v27  ;;  %2082 = vmatmul.msk.bf16.vlgmr.msra.gmra.mxu1 %vm374_vm0, %v2673_v27 }
 0x523   : > { %v1563_v51 = vpop.f32.mrf.mxu0 }
 0x524   : > { %v1564_v55 = vadd.f32 %v1563_v51, %v1373_v29 }
 0x52d   : > { %2081 = vmatmul.msk.bf16.gmra.mxu3 %vm374_vm0, %v2682_v31  ;;  %2083 = vmatmul.msk.bf16.gmra.mxu1 %vm374_vm0, %v2682_v31 }
 0x59a   : > { %v1575_v26 = vpop.f32.mrf.mxu1 }
 0x59b   : > { %v1576_v16 = vadd.f32 %v1575_v26, %v1557_v19 }
 0x59d   : > { %v1586_v30 = vmul.f32 0.2, %v1576_v16 }
 0x59f   : > { %v1594_v21 = vmax.f32 %v1576_v16, %v1586_v30 }
 0x5a0   : > { %v1537_v27 = vpop.f32.mrf.mxu3 }
 0x5a1   : > { %1602 = vst [vmem:[%s2728_s7 + $0x8] sm:$0xff] %v1594_v21  ;;  %v1538_v31 = vadd.f32 %v1537_v27, %v1519_v32 }
 0x5a2   : > { %v1577_v36 = vpop.f32.mrf.mxu1 }
 0x5a3   : > { %v1585_v37 = vmul.f32 0.2, %v1538_v31  ;;  %v1578_v38 = vadd.f32 %v1577_v36, %v1559_v22 }
 0x5a5   : > { %v1593_v39 = vmax.f32 %v1538_v31, %v1585_v37  ;;  %v1588_v40 = vmul.f32 0.2, %v1578_v38 }
 0x5a7   : > { %1601 = vst [vmem:[%s2728_s7] sm:$0xff] %v1593_v39  ;;  %v1596_v42 = vmax.f32 %v1578_v38, %v1588_v40 }
 0x5a8   : > { %v1539_v44 = vpop.f32.mrf.mxu3 }
 0x5a9   : > { %1604 = vst [vmem:[%s2728_s7 + $0x18] sm:$0xff] %v1596_v42  ;;  %v1540_v46 = vadd.f32 %v1539_v44, %v1521_v41 }
 0x5aa   : > { %v1580_v28 = vpop.f32.mrf.mxu1 }
 0x5ab   : > { %v1587_v48 = vmul.f32 0.2, %v1540_v46  ;;  %v1581_v33 = vadd.f32 %v1580_v28, %v1562_v45 }
 0x5ad   : > { %v1595_v49 = vmax.f32 %v1540_v46, %v1587_v48  ;;  %v1590_v50 = vmul.f32 0.2, %v1581_v33 }
 0x5af   : > { %1603 = vst [vmem:[%s2728_s7 + $0x10] sm:$0xff] %v1595_v49  ;;  %v1598_v53 = vmax.f32 %v1581_v33, %v1590_v50 }
 0x5b0   : > { %v1542_v54 = vpop.f32.mrf.mxu3 }
 0x5b1   : > { %1606 = vst [vmem:[%s2728_s7 + $0x28] sm:$0xff] %v1598_v53  ;;  %v1543_v56 = vadd.f32 %v1542_v54, %v1524_v52 }
 0x5b2   : > { %v1582_v57 = vpop.f32.mrf.mxu1 }
 0x5b3   : > { %v1589_v58 = vmul.f32 0.2, %v1543_v56  ;;  %v1583_v59 = vadd.f32 %v1582_v57, %v1564_v55 }
 0x5b5   : > { %v1597_v61 = vmax.f32 %v1543_v56, %v1589_v58  ;;  %v1592_v10 = vmul.f32 0.2, %v1583_v59 }
 0x5b7   : > { %1605 = vst [vmem:[%s2728_s7 + $0x20] sm:$0xff] %v1597_v61  ;;  %v1600_v63 = vmax.f32 %v1583_v59, %v1592_v10 }
 0x5b8   : > { %v1544_v0 = vpop.f32.mrf.mxu3 }
 0x5b9   : > { %1608 = vst [vmem:[%s2728_s7 + $0x38] sm:$0xff] %v1600_v63  ;;  %v1545_v1 = vadd.f32 %v1544_v0, %v1526_v62 }
 0x5bb   : > { %v1591_v15 = vmul.f32 0.2, %v1545_v1 }
 0x5bd   : > { %v1599_v2 = vmax.f32 %v1545_v1, %v1591_v15 }
 0x5bf   : > { %1607 = vst [vmem:[%s2728_s7 + $0x30] sm:$0xff] %v1599_v2 }
 0x5c0   : > { %2350 = shalt.err (!%p2347_p9)
}
 0x5c1   : > { %s2408_s28 = smov 256   ;;  %s2409_s26 = smov 512  }
 0x5c2   : > { %s2410_s7 = smov 16  }
 0x5c3   : > { %2185 = dma.vmem_to_hbm [thread:$0]  (%p2484_p6), %s1623_s12, 1024, %s1625_s13, %s1610_s22, %s2408_s28, %s2409_s26, %s2410_s7  }
 0x5c4 PF: > { %s1639_s8 = sand.u32 1, %s2381_s18   ;;  %p2195_p11 = pnand %p1719_p1, %p2490_p10 }
 0x5c5   : > { %s1640_s10 = scalar_lea.sflag [#allocation6], %s1639_s8 }
 0x5c6   : > { %p2196_p12 = pneg %p2195_p11 }
 0x5c8   : > { %2376 = dma.done.wait (%p2196_p12), %s1640_s10, 1024  }
 0x5c9   : > { %2378 = vsyncadd (%p2196_p12), %s1640_s10, 4294966272  ;;  %p17_p13 = scmp.ge.s32.totalorder %s2466_s24, 4   ;;  %s2782_s18 = smov %s2385_s19 }
 0x5ca   : > { %s2783_s19 = smov %s2389_s20  ;;  %s2784_s20 = smov %s2478_s27 }
 0x5cb   : > { %s2785_s21 = smov %s2466_s24  ;;  %19 = sbr.rel (!%p17_p13) target bundleno = 5 (0x5), region = 127 }
 0x5d0   :  { %1646 = vsyncpa [#allocation5], 1 }
 0x5d1   :  { %1648 = vsyncpa [#allocation5 + $0x1], 1 }
 0x5d2   :  { %1649 = vsyncpa [#allocation8], 1 }
 0x5d3   :  { %1650 = vsyncpa [#allocation6], 1 }
 0x5d4   :  { %1652 = vsyncpa [#allocation6 + $0x1], 1 }

</bundles_post_ra>
